<compile_context>
chip_gen: v7x
topology: tpu7x:2x2x1
jax: 0.10.0
libtpu: 0.0.40
codegen_flags: <defaults>
</compile_context>

<pallas_src>
import numpy as np
import jax
import jax.numpy as jnp
from jax import lax
from jax.experimental import pallas as pl
from jax.experimental.pallas import tpu as pltpu

THRESHOLD = 0.5      # braincog IFNode default threshold (hard reset to 0)
NUM_STN = 2          # number of STN neurons (fixed in the module)
_MAX_UNROLL_T = 32   # fully unroll + single output store up to this many steps


def _if_fire(mem, cur):
    """braincog IFNode: mem += I*dt ; spike = (mem >= 0.5) ; mem *= (1 - spike)."""
    mem = mem + cur
    spk = (mem >= THRESHOLD).astype(jnp.float32)
    return mem * (1.0 - spk), spk


def bg_kernel(params_ref, x_ref, gpe0_ref, out_ref):
    """T-step basal-ganglia recurrence. Pure VPU/XLU ops (no MXU, no weight DMA).

    params_ref: SMEM (2,)          [we, wi] runtime connection weights
    x_ref     : VMEM (T, B, ns)    cortex input currents (one row per forward() call)
    gpe0_ref  : VMEM (B, na)       module's previous self.out_Gpe (feeds the first STN step)
    out_ref   : VMEM (T, B, 3, ns) packed spikes:
                  [:, :, 0, :]  StrD1 compact (one value per state; all na copies identical)
                  [:, :, 1, :]  StrD2 compact
                  [:, :, 2, 0]  STN  (both STN neurons identical)
                  [:, :, 2, 1]  GPe  (all na neurons identical)
                  [:, :, 2, 2]  GPi  (all na neurons identical; forward()'s return value)
    """
    f32 = jnp.float32
    T, B, ns = x_ref.shape
    na = gpe0_ref.shape[1]

    we = params_ref[0]
    wi = params_ref[1]
    we_stn = 0.5 * we * NUM_STN           # STN -> GPe/GPi drive per STN spike (con6 all-ones)
    fb_coef = 0.5 * wi * float(na)        # GPe(t-1) -> STN feedback (na identical GPe spikes, con7)

    # Compile-time constant masks for the packed (3, ns) tile.
    row = lax.broadcasted_iota(jnp.int32, (3, ns), 0)
    col = lax.broadcasted_iota(jnp.int32, (3, ns), 1)
    mask_d12 = (row < 2).astype(f32)                       # rows 0,1: StrD1 / StrD2 currents
    mask_stn = ((row == 2) & (col == 0)).astype(f32)       # [2,0]: STN membrane / current
    mask_gpe = ((row == 2) & (col == 1)).astype(f32)       # [2,1]: GPe spike slot (output only)
    mask_gpi = ((row == 2) & (col == 2)).astype(f32)       # [2,2]: GPi spike slot (output only)

    # Initial state: membranes at rest; previous GPe enters STN only via its (scaled) sum.
    mem_pack = jnp.zeros((B, 3, ns), f32)
    mem_gpe = jnp.zeros((B, 1, 1), f32)
    mem_gpi = jnp.zeros((B, 1, 1), f32)
    stn_fb = (0.5 * wi) * jnp.sum(gpe0_ref[...], axis=-1, keepdims=True)[:, :, None]   # (B,1,1)
    carry0 = (mem_pack, mem_gpe, mem_gpi, stn_fb)

    def step(drive_t, carry):
        mem_pack, mem_gpe, mem_gpi, stn_fb = carry
        # Fused StrD1 / StrD2 / STN IF update: one add, one compare, one reset on the packed tile.
        mem_pack, spike = _if_fire(mem_pack, drive_t + mask_stn * stn_fb)
        # One lane reduce gives [sum(StrD1 spikes), sum(StrD2 spikes), STN spike] at once.
        sums = jnp.sum(spike, axis=-1, keepdims=True)              # (B, 3, 1)
        sum_d1 = sums[:, 0:1, :]
        sum_d2 = sums[:, 1:2, :]
        spk_stn = sums[:, 2:3, :]
        # GPe: IF( StrD2 @ wi*con4 + STN @ 0.5*we*con6 )  -- all na GPe neurons identical.
        mem_gpe, spk_gpe = _if_fire(mem_gpe, wi * sum_d2 + we_stn * spk_stn)
        # GPi: IF( StrD1 @ wi*con4 + GPe @ wi*I + STN @ 0.5*we*con6 ).
        mem_gpi, spk_gpi = _if_fire(mem_gpi, wi * sum_d1 + wi * spk_gpe + we_stn * spk_stn)
        # Packed per-step record: GPe/GPi spikes land in the always-zero lanes 1,2 of row 2.
        rec = spike + mask_gpe * spk_gpe + mask_gpi * spk_gpi
        stn_fb = fb_coef * spk_gpe                                  # feedback to next step's STN
        return (mem_pack, mem_gpe, mem_gpi, stn_fb), rec

    if T <= _MAX_UNROLL_T:
        # Hoist everything that does not depend on the recurrence out of the serial chain:
        #   rows 0,1 <- we*x ;  row 2, lane 0 <- we * sum_s x_s  (one batched XLU reduce for all T).
        wex = we * x_ref[...]                                            # (T, B, ns)
        stn_drive = jnp.sum(wex, axis=-1, keepdims=True)                 # (T, B, 1)
        drive = (wex[:, :, None, :] * mask_d12
                 + stn_drive[:, :, :, None] * mask_stn)                  # (T, B, 3, ns)
        carry = carry0
        recs = []
        for t in range(T):                       # fully unrolled; static slices / indices only
            carry, rec = step(drive[t], carry)
            recs.append(rec)
        # Single packed store after the recurrence (no masked stores inside the serial loop).
        out_ref[...] = jnp.stack(recs, axis=0)
    else:
        # Rolled fallback for long sequences: one packed store per step; loop-carried state stays
        # tiny (no (T, ...) value live across iterations).
        # TODO(synk): for very large T, chunk over a grid axis (membranes carried in scratch) or
        #             raise vmem_limit_bytes; the (T,B,3,ns) output pads to ~4 KiB per step.
        def body(t, carry):
            x_t = we * x_ref[t]                                          # (B, ns)
            drive_t = (x_t[:, None, :] * mask_d12
                       + jnp.sum(x_t, axis=-1, keepdims=True)[:, :, None] * mask_stn)
            carry, rec = step(drive_t, carry)
            out_ref[t] = rec
            return carry
        lax.fori_loop(0, T, body, carry0, unroll=4)


@jax.jit
def basalganglia_forward_seq(x_seq, gpe_prev, we, wi):
    """Run T recurrent forward() calls of the basalganglia module in one pallas_call.

    x_seq   : (T, B, ns) input currents (one per forward() call)
    gpe_prev: (B, na)    initial self.out_Gpe state
    we, wi  : runtime excitatory / inhibitory weights (traced -> changing them does NOT recompile)
    Returns dict of per-step population spikes; out_Gpi[t] is forward()'s return value at step t.
    With T == 1 this reduces to a single forward() from rest (membranes start at 0).
    """
    T, B, ns = x_seq.shape
    na = gpe_prev.shape[-1]
    assert ns >= 3, "packed output stores STN/GPe/GPi in row-2 lanes 0..2 (needs ns >= 3)"
    f32 = jnp.float32
    params = jnp.stack([jnp.asarray(we, f32), jnp.asarray(wi, f32)])     # (2,) SMEM scalars

    vmem = pl.BlockSpec(memory_space=pltpu.MemorySpace.VMEM)
    smem = pl.BlockSpec(memory_space=pltpu.MemorySpace.SMEM)
    # Whole (tiny, unpadded) arrays in VMEM; no grid: B == 1 has nothing to shard across cores.
    # TODO(synk): for B >= 2 on v7x, add a leading ("parallel",) batch grid axis for the 2nd TC.
    packed = pl.pallas_call(
        bg_kernel,
        out_shape=jax.ShapeDtypeStruct((T, B, 3, ns), f32),
        in_specs=[smem, vmem, vmem],
        out_specs=vmem,
    )(params, x_seq.astype(f32), gpe_prev.astype(f32))

    # One-time expansion of the compact representation (cheap XLA ops, outside the hot loop):
    # column i*na+j of we*con1 repeats state i, so each StrD1/StrD2 spike repeats na times;
    # all STN / GPe / GPi neurons within a population are identical.
    d1 = packed[:, :, 0, :]
    d2 = packed[:, :, 1, :]
    stn = packed[:, :, 2, 0:1]
    gpe = packed[:, :, 2, 1:2]
    gpi = packed[:, :, 2, 2:3]
    return dict(
        out_StrD1=jnp.repeat(d1, na, axis=-1),               # (T, B, ns*na)
        out_StrD2=jnp.repeat(d2, na, axis=-1),
        out_STN=jnp.broadcast_to(stn, (T, B, NUM_STN)),
        out_Gpe=jnp.broadcast_to(gpe, (T, B, na)),
        out_Gpi=jnp.broadcast_to(gpi, (T, B, na)),           # module return value per step
    )


def make_bg_weights(ns, na, we, wi):
    """Deterministic construction of the 9 CustomLinear weights from __init__ (reference only)."""
    con1 = np.zeros((ns, ns * na), np.float32)
    for i in range(ns):
        for j in range(na):
            con1[i, i * na + j] = 1.0
    con3 = np.ones((ns, NUM_STN), np.float32)
    con4 = np.zeros((ns * na, na), np.float32)
    for i in range(ns):
        for j in range(na):
            con4[i * na + j, j] = 1.0
    con5 = np.eye(na, dtype=np.float32)
    con6 = np.ones((NUM_STN, na), np.float32)
    con7 = np.ones((na, NUM_STN), np.float32)
    return dict(
        w_strd1=we * con1,           # connection[0]
        w_strd2=we * con1,           # connection[1]
        w_str_stn=we * con3,         # connection[2]
        w_d1_gpi=wi * con4,          # connection[3]
        w_d2_gpe=wi * con4,          # connection[4]
        w_gpe_gpi=wi * con5,         # connection[5]
        w_stn_gpi=0.5 * we * con6,   # connection[6]
        w_stn_gpe=0.5 * we * con6,   # connection[7]
        w_gpe_stn=0.5 * wi * con7,   # connection[8]
    )


def ref_sim_numpy(x_seq, gpe0, w, ns, na):
    """Full-fidelity reference: dense 9-matrix matmuls, per-neuron IF membranes, T steps."""
    T, B, _ = x_seq.shape

    def if_step(mem, i):
        mem = mem + i
        s = (mem >= THRESHOLD).astype(np.float32)
        return mem * (1.0 - s), s

    mem = dict(d1=np.zeros((B, ns * na), np.float32),
               d2=np.zeros((B, ns * na), np.float32),
               stn=np.zeros((B, NUM_STN), np.float32),
               gpe=np.zeros((B, na), np.float32),
               gpi=np.zeros((B, na), np.float32))
    gpe = gpe0.astype(np.float32)
    seq = {k: [] for k in ("out_StrD1", "out_StrD2", "out_STN", "out_Gpe", "out_Gpi")}
    for t in range(T):
        x = x_seq[t]
        mem["d1"], s_d1 = if_step(mem["d1"], x @ w["w_strd1"])
        mem["d2"], s_d2 = if_step(mem["d2"], x @ w["w_strd2"])
        mem["stn"], s_stn = if_step(mem["stn"], x @ w["w_str_stn"] + gpe @ w["w_gpe_stn"])
        mem["gpe"], s_gpe = if_step(mem["gpe"], s_d2 @ w["w_d2_gpe"] + s_stn @ w["w_stn_gpe"])
        mem["gpi"], s_gpi = if_step(
            mem["gpi"],
            s_d1 @ w["w_d1_gpi"] + s_gpe @ w["w_gpe_gpi"] + s_stn @ w["w_stn_gpi"])
        gpe = s_gpe
        seq["out_StrD1"].append(s_d1)
        seq["out_StrD2"].append(s_d2)
        seq["out_STN"].append(s_stn)
        seq["out_Gpe"].append(s_gpe)
        seq["out_Gpi"].append(s_gpi)
    return {k: np.stack(v, axis=0) for k, v in seq.items()}


if __name__ == "__main__":
    ns, na = 8, 4            # num_state, num_action
    we, wi = 1.0, -0.125     # excitatory / inhibitory connection weights (exact binary fractions)
    key = jax.random.PRNGKey(0)

    def run_case(case_key, T, B):
        kx, kg = jax.random.split(case_key)
        # Inputs quantized to multiples of 1/64 so every current / membrane value is exactly
        # representable in f32 -> the spike-for-spike equality check vs. the dense reference is
        # independent of reduction order (addresses the threshold-brittleness concern).
        x = jax.random.uniform(kx, (T, B, ns), dtype=jnp.float32, minval=0.0, maxval=0.6)
        x = jnp.round(x * 64.0) / 64.0
        gpe0 = jax.random.bernoulli(kg, 0.5, (B, na)).astype(jnp.float32)

        out = basalganglia_forward_seq(x, gpe0, we, wi)
        out = jax.tree_util.tree_map(jax.block_until_ready, out)

        w = make_bg_weights(ns, na, we, wi)
        ref = ref_sim_numpy(np.asarray(x), np.asarray(gpe0), w, ns, na)
        for k in ("out_StrD1", "out_StrD2", "out_STN", "out_Gpe", "out_Gpi"):
            np.testing.assert_array_equal(np.asarray(out[k]), ref[k], err_msg=f"{k} (T={T})")

    k1, k2 = jax.random.split(key)
    run_case(k1, T=8, B=1)    # fully-unrolled path: single packed store after the recurrence
    run_case(k2, T=40, B=1)   # rolled fori_loop fallback path (T > 32), one packed store per step

    print("KERNEL_OK")
</pallas_src>

<mosaic_0001>
module attributes {stable_mosaic.version = 11 : i64} {
  func.func @bg_kernel(%arg0: memref<2xf32, #tpu.memory_space<smem>>, %arg1: memref<8x1x8xf32, #tpu.memory_space<vmem>>, %arg2: memref<1x4xf32, #tpu.memory_space<vmem>>, %arg3: memref<8x1x3x8xf32, #tpu.memory_space<vmem>>) attributes {dimension_semantics = [], scalar_prefetch = 0 : i64, scratch_operands = 0 : i64, tpu.core_type = #tpu.core_type<tc>} {
    %c0 = arith.constant 0 : index
    %0 = memref.load %arg0[%c0] : memref<2xf32, #tpu.memory_space<smem>>
    %c1 = arith.constant 1 : index
    %1 = memref.load %arg0[%c1] : memref<2xf32, #tpu.memory_space<smem>>
    %cst = arith.constant 5.000000e-01 : f32
    %2 = arith.mulf %cst, %0 : f32
    %cst_0 = arith.constant 2.000000e+00 : f32
    %3 = arith.mulf %2, %cst_0 : f32
    %cst_1 = arith.constant 5.000000e-01 : f32
    %4 = arith.mulf %cst_1, %1 : f32
    %cst_2 = arith.constant 4.000000e+00 : f32
    %5 = arith.mulf %4, %cst_2 : f32
    %6 = tpu.iota {dimensions = array<i32: 0>} : vector<3x8xi32>
    %7 = tpu.iota {dimensions = array<i32: 1>} : vector<3x8xi32>
    %c2_i32 = arith.constant 2 : i32
    %8 = vector.broadcast %c2_i32 : i32 to vector<3x8xi32>
    %9 = arith.cmpi slt, %6, %8 : vector<3x8xi32>
    %10 = arith.extui %9 : vector<3x8xi1> to vector<3x8xi32>
    %11 = arith.sitofp %10 : vector<3x8xi32> to vector<3x8xf32>
    %c2_i32_3 = arith.constant 2 : i32
    %12 = vector.broadcast %c2_i32_3 : i32 to vector<3x8xi32>
    %13 = arith.cmpi eq, %6, %12 : vector<3x8xi32>
    %c0_i32 = arith.constant 0 : i32
    %14 = vector.broadcast %c0_i32 : i32 to vector<3x8xi32>
    %15 = arith.cmpi eq, %7, %14 : vector<3x8xi32>
    %16 = arith.andi %13, %15 : vector<3x8xi1>
    %17 = arith.extui %16 : vector<3x8xi1> to vector<3x8xi32>
    %18 = arith.sitofp %17 : vector<3x8xi32> to vector<3x8xf32>
    %c2_i32_4 = arith.constant 2 : i32
    %19 = vector.broadcast %c2_i32_4 : i32 to vector<3x8xi32>
    %20 = arith.cmpi eq, %6, %19 : vector<3x8xi32>
    %c1_i32 = arith.constant 1 : i32
    %21 = vector.broadcast %c1_i32 : i32 to vector<3x8xi32>
    %22 = arith.cmpi eq, %7, %21 : vector<3x8xi32>
    %23 = arith.andi %20, %22 : vector<3x8xi1>
    %24 = arith.extui %23 : vector<3x8xi1> to vector<3x8xi32>
    %25 = arith.sitofp %24 : vector<3x8xi32> to vector<3x8xf32>
    %c2_i32_5 = arith.constant 2 : i32
    %26 = vector.broadcast %c2_i32_5 : i32 to vector<3x8xi32>
    %27 = arith.cmpi eq, %6, %26 : vector<3x8xi32>
    %c2_i32_6 = arith.constant 2 : i32
    %28 = vector.broadcast %c2_i32_6 : i32 to vector<3x8xi32>
    %29 = arith.cmpi eq, %7, %28 : vector<3x8xi32>
    %30 = arith.andi %27, %29 : vector<3x8xi1>
    %31 = arith.extui %30 : vector<3x8xi1> to vector<3x8xi32>
    %32 = arith.sitofp %31 : vector<3x8xi32> to vector<3x8xf32>
    %cst_7 = arith.constant 0.000000e+00 : f32
    %33 = vector.broadcast %cst_7 : f32 to vector<1x3x8xf32>
    %cst_8 = arith.constant 0.000000e+00 : f32
    %34 = vector.broadcast %cst_8 : f32 to vector<1x1x1xf32>
    %cst_9 = arith.constant 0.000000e+00 : f32
    %35 = vector.broadcast %cst_9 : f32 to vector<1x1x1xf32>
    %cst_10 = arith.constant 5.000000e-01 : f32
    %36 = arith.mulf %cst_10, %1 : f32
    %c0_11 = arith.constant 0 : index
    %c0_12 = arith.constant 0 : index
    %37 = vector.load %arg2[%c0_11, %c0_12] : memref<1x4xf32, #tpu.memory_space<vmem>>, vector<1x4xf32>
    %cst_13 = arith.constant dense<0.000000e+00> : vector<1xf32>
    %38 = vector.multi_reduction <add>, %37, %cst_13 [1] : vector<1x4xf32> to vector<1xf32>
    %39 = vector.shape_cast %38 : vector<1xf32> to vector<1x1xf32>
    %40 = vector.shape_cast %39 : vector<1x1xf32> to vector<1x1x1xf32>
    %41 = vector.broadcast %36 : f32 to vector<1x1x1xf32>
    %42 = arith.mulf %41, %40 : vector<1x1x1xf32>
    %c0_14 = arith.constant 0 : index
    %c0_15 = arith.constant 0 : index
    %c0_16 = arith.constant 0 : index
    %43 = vector.load %arg1[%c0_14, %c0_15, %c0_16] : memref<8x1x8xf32, #tpu.memory_space<vmem>>, vector<8x1x8xf32>
    %44 = vector.broadcast %0 : f32 to vector<8x1x8xf32>
    %45 = arith.mulf %44, %43 : vector<8x1x8xf32>
    %cst_17 = arith.constant dense<0.000000e+00> : vector<8x1xf32>
    %46 = vector.multi_reduction <add>, %45, %cst_17 [2] : vector<8x1x8xf32> to vector<8x1xf32>
    %47 = vector.shape_cast %46 : vector<8x1xf32> to vector<8x1x1xf32>
    %48 = vector.shape_cast %45 : vector<8x1x8xf32> to vector<8x1x1x8xf32>
    %49 = vector.shape_cast %11 : vector<3x8xf32> to vector<1x1x3x8xf32>
    %50 = vector.broadcast %48 : vector<8x1x1x8xf32> to vector<8x1x3x8xf32>
    %51 = vector.broadcast %49 : vector<1x1x3x8xf32> to vector<8x1x3x8xf32>
    %52 = arith.mulf %50, %51 : vector<8x1x3x8xf32>
    %53 = vector.shape_cast %47 : vector<8x1x1xf32> to vector<8x1x1x1xf32>
    %54 = vector.shape_cast %18 : vector<3x8xf32> to vector<1x1x3x8xf32>
    %55 = vector.broadcast %53 : vector<8x1x1x1xf32> to vector<8x1x3x8xf32>
    %56 = vector.broadcast %54 : vector<1x1x3x8xf32> to vector<8x1x3x8xf32>
    %57 = arith.mulf %55, %56 : vector<8x1x3x8xf32>
    %58 = arith.addf %52, %57 : vector<8x1x3x8xf32>
    %59 = vector.extract_strided_slice %58 {offsets = [0, 0, 0, 0], sizes = [1, 1, 3, 8], strides = [1, 1, 1, 1]} : vector<8x1x3x8xf32> to vector<1x1x3x8xf32>
    %60 = vector.shape_cast %59 : vector<1x1x3x8xf32> to vector<1x3x8xf32>
    %61 = vector.shape_cast %18 : vector<3x8xf32> to vector<1x3x8xf32>
    %62 = vector.broadcast %42 : vector<1x1x1xf32> to vector<1x3x8xf32>
    %63 = arith.mulf %61, %62 : vector<1x3x8xf32>
    %64 = arith.addf %60, %63 : vector<1x3x8xf32>
    %65 = arith.addf %33, %64 : vector<1x3x8xf32>
    %cst_18 = arith.constant 5.000000e-01 : f32
    %66 = vector.broadcast %cst_18 : f32 to vector<1x3x8xf32>
    %67 = arith.cmpf oge, %65, %66 : vector<1x3x8xf32>
    %68 = arith.extui %67 : vector<1x3x8xi1> to vector<1x3x8xi32>
    %69 = arith.sitofp %68 : vector<1x3x8xi32> to vector<1x3x8xf32>
    %cst_19 = arith.constant 1.000000e+00 : f32
    %70 = vector.broadcast %cst_19 : f32 to vector<1x3x8xf32>
    %71 = arith.subf %70, %69 : vector<1x3x8xf32>
    %72 = arith.mulf %65, %71 : vector<1x3x8xf32>
    %cst_20 = arith.constant dense<0.000000e+00> : vector<1x3xf32>
    %73 = vector.multi_reduction <add>, %69, %cst_20 [2] : vector<1x3x8xf32> to vector<1x3xf32>
    %74 = vector.shape_cast %73 : vector<1x3xf32> to vector<1x3x1xf32>
    %75 = vector.extract_strided_slice %74 {offsets = [0, 0, 0], sizes = [1, 1, 1], strides = [1, 1, 1]} : vector<1x3x1xf32> to vector<1x1x1xf32>
    %76 = vector.extract_strided_slice %74 {offsets = [0, 1, 0], sizes = [1, 1, 1], strides = [1, 1, 1]} : vector<1x3x1xf32> to vector<1x1x1xf32>
    %77 = vector.extract_strided_slice %74 {offsets = [0, 2, 0], sizes = [1, 1, 1], strides = [1, 1, 1]} : vector<1x3x1xf32> to vector<1x1x1xf32>
    %78 = vector.broadcast %1 : f32 to vector<1x1x1xf32>
    %79 = arith.mulf %78, %76 : vector<1x1x1xf32>
    %80 = vector.broadcast %3 : f32 to vector<1x1x1xf32>
    %81 = arith.mulf %80, %77 : vector<1x1x1xf32>
    %82 = arith.addf %79, %81 : vector<1x1x1xf32>
    %83 = arith.addf %34, %82 : vector<1x1x1xf32>
    %cst_21 = arith.constant 5.000000e-01 : f32
    %84 = vector.broadcast %cst_21 : f32 to vector<1x1x1xf32>
    %85 = arith.cmpf oge, %83, %84 : vector<1x1x1xf32>
    %86 = arith.extui %85 : vector<1x1x1xi1> to vector<1x1x1xi32>
    %87 = arith.sitofp %86 : vector<1x1x1xi32> to vector<1x1x1xf32>
    %cst_22 = arith.constant 1.000000e+00 : f32
    %88 = vector.broadcast %cst_22 : f32 to vector<1x1x1xf32>
    %89 = arith.subf %88, %87 : vector<1x1x1xf32>
    %90 = arith.mulf %83, %89 : vector<1x1x1xf32>
    %91 = vector.broadcast %1 : f32 to vector<1x1x1xf32>
    %92 = arith.mulf %91, %75 : vector<1x1x1xf32>
    %93 = vector.broadcast %1 : f32 to vector<1x1x1xf32>
    %94 = arith.mulf %93, %87 : vector<1x1x1xf32>
    %95 = arith.addf %92, %94 : vector<1x1x1xf32>
    %96 = vector.broadcast %3 : f32 to vector<1x1x1xf32>
    %97 = arith.mulf %96, %77 : vector<1x1x1xf32>
    %98 = arith.addf %95, %97 : vector<1x1x1xf32>
    %99 = arith.addf %35, %98 : vector<1x1x1xf32>
    %cst_23 = arith.constant 5.000000e-01 : f32
    %100 = vector.broadcast %cst_23 : f32 to vector<1x1x1xf32>
    %101 = arith.cmpf oge, %99, %100 : vector<1x1x1xf32>
    %102 = arith.extui %101 : vector<1x1x1xi1> to vector<1x1x1xi32>
    %103 = arith.sitofp %102 : vector<1x1x1xi32> to vector<1x1x1xf32>
    %cst_24 = arith.constant 1.000000e+00 : f32
    %104 = vector.broadcast %cst_24 : f32 to vector<1x1x1xf32>
    %105 = arith.subf %104, %103 : vector<1x1x1xf32>
    %106 = arith.mulf %99, %105 : vector<1x1x1xf32>
    %107 = vector.shape_cast %25 : vector<3x8xf32> to vector<1x3x8xf32>
    %108 = vector.broadcast %87 : vector<1x1x1xf32> to vector<1x3x8xf32>
    %109 = arith.mulf %107, %108 : vector<1x3x8xf32>
    %110 = arith.addf %69, %109 : vector<1x3x8xf32>
    %111 = vector.shape_cast %32 : vector<3x8xf32> to vector<1x3x8xf32>
    %112 = vector.broadcast %103 : vector<1x1x1xf32> to vector<1x3x8xf32>
    %113 = arith.mulf %111, %112 : vector<1x3x8xf32>
    %114 = arith.addf %110, %113 : vector<1x3x8xf32>
    %115 = vector.broadcast %5 : f32 to vector<1x1x1xf32>
    %116 = arith.mulf %115, %87 : vector<1x1x1xf32>
    %117 = vector.extract_strided_slice %58 {offsets = [1, 0, 0, 0], sizes = [1, 1, 3, 8], strides = [1, 1, 1, 1]} : vector<8x1x3x8xf32> to vector<1x1x3x8xf32>
    %118 = vector.shape_cast %117 : vector<1x1x3x8xf32> to vector<1x3x8xf32>
    %119 = vector.shape_cast %18 : vector<3x8xf32> to vector<1x3x8xf32>
    %120 = vector.broadcast %116 : vector<1x1x1xf32> to vector<1x3x8xf32>
    %121 = arith.mulf %119, %120 : vector<1x3x8xf32>
    %122 = arith.addf %118, %121 : vector<1x3x8xf32>
    %123 = arith.addf %72, %122 : vector<1x3x8xf32>
    %cst_25 = arith.constant 5.000000e-01 : f32
    %124 = vector.broadcast %cst_25 : f32 to vector<1x3x8xf32>
    %125 = arith.cmpf oge, %123, %124 : vector<1x3x8xf32>
    %126 = arith.extui %125 : vector<1x3x8xi1> to vector<1x3x8xi32>
    %127 = arith.sitofp %126 : vector<1x3x8xi32> to vector<1x3x8xf32>
    %cst_26 = arith.constant 1.000000e+00 : f32
    %128 = vector.broadcast %cst_26 : f32 to vector<1x3x8xf32>
    %129 = arith.subf %128, %127 : vector<1x3x8xf32>
    %130 = arith.mulf %123, %129 : vector<1x3x8xf32>
    %cst_27 = arith.constant dense<0.000000e+00> : vector<1x3xf32>
    %131 = vector.multi_reduction <add>, %127, %cst_27 [2] : vector<1x3x8xf32> to vector<1x3xf32>
    %132 = vector.shape_cast %131 : vector<1x3xf32> to vector<1x3x1xf32>
    %133 = vector.extract_strided_slice %132 {offsets = [0, 0, 0], sizes = [1, 1, 1], strides = [1, 1, 1]} : vector<1x3x1xf32> to vector<1x1x1xf32>
    %134 = vector.extract_strided_slice %132 {offsets = [0, 1, 0], sizes = [1, 1, 1], strides = [1, 1, 1]} : vector<1x3x1xf32> to vector<1x1x1xf32>
    %135 = vector.extract_strided_slice %132 {offsets = [0, 2, 0], sizes = [1, 1, 1], strides = [1, 1, 1]} : vector<1x3x1xf32> to vector<1x1x1xf32>
    %136 = vector.broadcast %1 : f32 to vector<1x1x1xf32>
    %137 = arith.mulf %136, %134 : vector<1x1x1xf32>
    %138 = vector.broadcast %3 : f32 to vector<1x1x1xf32>
    %139 = arith.mulf %138, %135 : vector<1x1x1xf32>
    %140 = arith.addf %137, %139 : vector<1x1x1xf32>
    %141 = arith.addf %90, %140 : vector<1x1x1xf32>
    %cst_28 = arith.constant 5.000000e-01 : f32
    %142 = vector.broadcast %cst_28 : f32 to vector<1x1x1xf32>
    %143 = arith.cmpf oge, %141, %142 : vector<1x1x1xf32>
    %144 = arith.extui %143 : vector<1x1x1xi1> to vector<1x1x1xi32>
    %145 = arith.sitofp %144 : vector<1x1x1xi32> to vector<1x1x1xf32>
    %cst_29 = arith.constant 1.000000e+00 : f32
    %146 = vector.broadcast %cst_29 : f32 to vector<1x1x1xf32>
    %147 = arith.subf %146, %145 : vector<1x1x1xf32>
    %148 = arith.mulf %141, %147 : vector<1x1x1xf32>
    %149 = vector.broadcast %1 : f32 to vector<1x1x1xf32>
    %150 = arith.mulf %149, %133 : vector<1x1x1xf32>
    %151 = vector.broadcast %1 : f32 to vector<1x1x1xf32>
    %152 = arith.mulf %151, %145 : vector<1x1x1xf32>
    %153 = arith.addf %150, %152 : vector<1x1x1xf32>
    %154 = vector.broadcast %3 : f32 to vector<1x1x1xf32>
    %155 = arith.mulf %154, %135 : vector<1x1x1xf32>
    %156 = arith.addf %153, %155 : vector<1x1x1xf32>
    %157 = arith.addf %106, %156 : vector<1x1x1xf32>
    %cst_30 = arith.constant 5.000000e-01 : f32
    %158 = vector.broadcast %cst_30 : f32 to vector<1x1x1xf32>
    %159 = arith.cmpf oge, %157, %158 : vector<1x1x1xf32>
    %160 = arith.extui %159 : vector<1x1x1xi1> to vector<1x1x1xi32>
    %161 = arith.sitofp %160 : vector<1x1x1xi32> to vector<1x1x1xf32>
    %cst_31 = arith.constant 1.000000e+00 : f32
    %162 = vector.broadcast %cst_31 : f32 to vector<1x1x1xf32>
    %163 = arith.subf %162, %161 : vector<1x1x1xf32>
    %164 = arith.mulf %157, %163 : vector<1x1x1xf32>
    %165 = vector.shape_cast %25 : vector<3x8xf32> to vector<1x3x8xf32>
    %166 = vector.broadcast %145 : vector<1x1x1xf32> to vector<1x3x8xf32>
    %167 = arith.mulf %165, %166 : vector<1x3x8xf32>
    %168 = arith.addf %127, %167 : vector<1x3x8xf32>
    %169 = vector.shape_cast %32 : vector<3x8xf32> to vector<1x3x8xf32>
    %170 = vector.broadcast %161 : vector<1x1x1xf32> to vector<1x3x8xf32>
    %171 = arith.mulf %169, %170 : vector<1x3x8xf32>
    %172 = arith.addf %168, %171 : vector<1x3x8xf32>
    %173 = vector.broadcast %5 : f32 to vector<1x1x1xf32>
    %174 = arith.mulf %173, %145 : vector<1x1x1xf32>
    %175 = vector.extract_strided_slice %58 {offsets = [2, 0, 0, 0], sizes = [1, 1, 3, 8], strides = [1, 1, 1, 1]} : vector<8x1x3x8xf32> to vector<1x1x3x8xf32>
    %176 = vector.shape_cast %175 : vector<1x1x3x8xf32> to vector<1x3x8xf32>
    %177 = vector.shape_cast %18 : vector<3x8xf32> to vector<1x3x8xf32>
    %178 = vector.broadcast %174 : vector<1x1x1xf32> to vector<1x3x8xf32>
    %179 = arith.mulf %177, %178 : vector<1x3x8xf32>
    %180 = arith.addf %176, %179 : vector<1x3x8xf32>
    %181 = arith.addf %130, %180 : vector<1x3x8xf32>
    %cst_32 = arith.constant 5.000000e-01 : f32
    %182 = vector.broadcast %cst_32 : f32 to vector<1x3x8xf32>
    %183 = arith.cmpf oge, %181, %182 : vector<1x3x8xf32>
    %184 = arith.extui %183 : vector<1x3x8xi1> to vector<1x3x8xi32>
    %185 = arith.sitofp %184 : vector<1x3x8xi32> to vector<1x3x8xf32>
    %cst_33 = arith.constant 1.000000e+00 : f32
    %186 = vector.broadcast %cst_33 : f32 to vector<1x3x8xf32>
    %187 = arith.subf %186, %185 : vector<1x3x8xf32>
    %188 = arith.mulf %181, %187 : vector<1x3x8xf32>
    %cst_34 = arith.constant dense<0.000000e+00> : vector<1x3xf32>
    %189 = vector.multi_reduction <add>, %185, %cst_34 [2] : vector<1x3x8xf32> to vector<1x3xf32>
    %190 = vector.shape_cast %189 : vector<1x3xf32> to vector<1x3x1xf32>
    %191 = vector.extract_strided_slice %190 {offsets = [0, 0, 0], sizes = [1, 1, 1], strides = [1, 1, 1]} : vector<1x3x1xf32> to vector<1x1x1xf32>
    %192 = vector.extract_strided_slice %190 {offsets = [0, 1, 0], sizes = [1, 1, 1], strides = [1, 1, 1]} : vector<1x3x1xf32> to vector<1x1x1xf32>
    %193 = vector.extract_strided_slice %190 {offsets = [0, 2, 0], sizes = [1, 1, 1], strides = [1, 1, 1]} : vector<1x3x1xf32> to vector<1x1x1xf32>
    %194 = vector.broadcast %1 : f32 to vector<1x1x1xf32>
    %195 = arith.mulf %194, %192 : vector<1x1x1xf32>
    %196 = vector.broadcast %3 : f32 to vector<1x1x1xf32>
    %197 = arith.mulf %196, %193 : vector<1x1x1xf32>
    %198 = arith.addf %195, %197 : vector<1x1x1xf32>
    %199 = arith.addf %148, %198 : vector<1x1x1xf32>
    %cst_35 = arith.constant 5.000000e-01 : f32
    %200 = vector.broadcast %cst_35 : f32 to vector<1x1x1xf32>
    %201 = arith.cmpf oge, %199, %200 : vector<1x1x1xf32>
    %202 = arith.extui %201 : vector<1x1x1xi1> to vector<1x1x1xi32>
    %203 = arith.sitofp %202 : vector<1x1x1xi32> to vector<1x1x1xf32>
    %cst_36 = arith.constant 1.000000e+00 : f32
    %204 = vector.broadcast %cst_36 : f32 to vector<1x1x1xf32>
    %205 = arith.subf %204, %203 : vector<1x1x1xf32>
    %206 = arith.mulf %199, %205 : vector<1x1x1xf32>
    %207 = vector.broadcast %1 : f32 to vector<1x1x1xf32>
    %208 = arith.mulf %207, %191 : vector<1x1x1xf32>
    %209 = vector.broadcast %1 : f32 to vector<1x1x1xf32>
    %210 = arith.mulf %209, %203 : vector<1x1x1xf32>
    %211 = arith.addf %208, %210 : vector<1x1x1xf32>
    %212 = vector.broadcast %3 : f32 to vector<1x1x1xf32>
    %213 = arith.mulf %212, %193 : vector<1x1x1xf32>
    %214 = arith.addf %211, %213 : vector<1x1x1xf32>
    %215 = arith.addf %164, %214 : vector<1x1x1xf32>
    %cst_37 = arith.constant 5.000000e-01 : f32
    %216 = vector.broadcast %cst_37 : f32 to vector<1x1x1xf32>
    %217 = arith.cmpf oge, %215, %216 : vector<1x1x1xf32>
    %218 = arith.extui %217 : vector<1x1x1xi1> to vector<1x1x1xi32>
    %219 = arith.sitofp %218 : vector<1x1x1xi32> to vector<1x1x1xf32>
    %cst_38 = arith.constant 1.000000e+00 : f32
    %220 = vector.broadcast %cst_38 : f32 to vector<1x1x1xf32>
    %221 = arith.subf %220, %219 : vector<1x1x1xf32>
    %222 = arith.mulf %215, %221 : vector<1x1x1xf32>
    %223 = vector.shape_cast %25 : vector<3x8xf32> to vector<1x3x8xf32>
    %224 = vector.broadcast %203 : vector<1x1x1xf32> to vector<1x3x8xf32>
    %225 = arith.mulf %223, %224 : vector<1x3x8xf32>
    %226 = arith.addf %185, %225 : vector<1x3x8xf32>
    %227 = vector.shape_cast %32 : vector<3x8xf32> to vector<1x3x8xf32>
    %228 = vector.broadcast %219 : vector<1x1x1xf32> to vector<1x3x8xf32>
    %229 = arith.mulf %227, %228 : vector<1x3x8xf32>
    %230 = arith.addf %226, %229 : vector<1x3x8xf32>
    %231 = vector.broadcast %5 : f32 to vector<1x1x1xf32>
    %232 = arith.mulf %231, %203 : vector<1x1x1xf32>
    %233 = vector.extract_strided_slice %58 {offsets = [3, 0, 0, 0], sizes = [1, 1, 3, 8], strides = [1, 1, 1, 1]} : vector<8x1x3x8xf32> to vector<1x1x3x8xf32>
    %234 = vector.shape_cast %233 : vector<1x1x3x8xf32> to vector<1x3x8xf32>
    %235 = vector.shape_cast %18 : vector<3x8xf32> to vector<1x3x8xf32>
    %236 = vector.broadcast %232 : vector<1x1x1xf32> to vector<1x3x8xf32>
    %237 = arith.mulf %235, %236 : vector<1x3x8xf32>
    %238 = arith.addf %234, %237 : vector<1x3x8xf32>
    %239 = arith.addf %188, %238 : vector<1x3x8xf32>
    %cst_39 = arith.constant 5.000000e-01 : f32
    %240 = vector.broadcast %cst_39 : f32 to vector<1x3x8xf32>
    %241 = arith.cmpf oge, %239, %240 : vector<1x3x8xf32>
    %242 = arith.extui %241 : vector<1x3x8xi1> to vector<1x3x8xi32>
    %243 = arith.sitofp %242 : vector<1x3x8xi32> to vector<1x3x8xf32>
    %cst_40 = arith.constant 1.000000e+00 : f32
    %244 = vector.broadcast %cst_40 : f32 to vector<1x3x8xf32>
    %245 = arith.subf %244, %243 : vector<1x3x8xf32>
    %246 = arith.mulf %239, %245 : vector<1x3x8xf32>
    %cst_41 = arith.constant dense<0.000000e+00> : vector<1x3xf32>
    %247 = vector.multi_reduction <add>, %243, %cst_41 [2] : vector<1x3x8xf32> to vector<1x3xf32>
    %248 = vector.shape_cast %247 : vector<1x3xf32> to vector<1x3x1xf32>
    %249 = vector.extract_strided_slice %248 {offsets = [0, 0, 0], sizes = [1, 1, 1], strides = [1, 1, 1]} : vector<1x3x1xf32> to vector<1x1x1xf32>
    %250 = vector.extract_strided_slice %248 {offsets = [0, 1, 0], sizes = [1, 1, 1], strides = [1, 1, 1]} : vector<1x3x1xf32> to vector<1x1x1xf32>
    %251 = vector.extract_strided_slice %248 {offsets = [0, 2, 0], sizes = [1, 1, 1], strides = [1, 1, 1]} : vector<1x3x1xf32> to vector<1x1x1xf32>
    %252 = vector.broadcast %1 : f32 to vector<1x1x1xf32>
    %253 = arith.mulf %252, %250 : vector<1x1x1xf32>
    %254 = vector.broadcast %3 : f32 to vector<1x1x1xf32>
    %255 = arith.mulf %254, %251 : vector<1x1x1xf32>
    %256 = arith.addf %253, %255 : vector<1x1x1xf32>
    %257 = arith.addf %206, %256 : vector<1x1x1xf32>
    %cst_42 = arith.constant 5.000000e-01 : f32
    %258 = vector.broadcast %cst_42 : f32 to vector<1x1x1xf32>
    %259 = arith.cmpf oge, %257, %258 : vector<1x1x1xf32>
    %260 = arith.extui %259 : vector<1x1x1xi1> to vector<1x1x1xi32>
    %261 = arith.sitofp %260 : vector<1x1x1xi32> to vector<1x1x1xf32>
    %cst_43 = arith.constant 1.000000e+00 : f32
    %262 = vector.broadcast %cst_43 : f32 to vector<1x1x1xf32>
    %263 = arith.subf %262, %261 : vector<1x1x1xf32>
    %264 = arith.mulf %257, %263 : vector<1x1x1xf32>
    %265 = vector.broadcast %1 : f32 to vector<1x1x1xf32>
    %266 = arith.mulf %265, %249 : vector<1x1x1xf32>
    %267 = vector.broadcast %1 : f32 to vector<1x1x1xf32>
    %268 = arith.mulf %267, %261 : vector<1x1x1xf32>
    %269 = arith.addf %266, %268 : vector<1x1x1xf32>
    %270 = vector.broadcast %3 : f32 to vector<1x1x1xf32>
    %271 = arith.mulf %270, %251 : vector<1x1x1xf32>
    %272 = arith.addf %269, %271 : vector<1x1x1xf32>
    %273 = arith.addf %222, %272 : vector<1x1x1xf32>
    %cst_44 = arith.constant 5.000000e-01 : f32
    %274 = vector.broadcast %cst_44 : f32 to vector<1x1x1xf32>
    %275 = arith.cmpf oge, %273, %274 : vector<1x1x1xf32>
    %276 = arith.extui %275 : vector<1x1x1xi1> to vector<1x1x1xi32>
    %277 = arith.sitofp %276 : vector<1x1x1xi32> to vector<1x1x1xf32>
    %cst_45 = arith.constant 1.000000e+00 : f32
    %278 = vector.broadcast %cst_45 : f32 to vector<1x1x1xf32>
    %279 = arith.subf %278, %277 : vector<1x1x1xf32>
    %280 = arith.mulf %273, %279 : vector<1x1x1xf32>
    %281 = vector.shape_cast %25 : vector<3x8xf32> to vector<1x3x8xf32>
    %282 = vector.broadcast %261 : vector<1x1x1xf32> to vector<1x3x8xf32>
    %283 = arith.mulf %281, %282 : vector<1x3x8xf32>
    %284 = arith.addf %243, %283 : vector<1x3x8xf32>
    %285 = vector.shape_cast %32 : vector<3x8xf32> to vector<1x3x8xf32>
    %286 = vector.broadcast %277 : vector<1x1x1xf32> to vector<1x3x8xf32>
    %287 = arith.mulf %285, %286 : vector<1x3x8xf32>
    %288 = arith.addf %284, %287 : vector<1x3x8xf32>
    %289 = vector.broadcast %5 : f32 to vector<1x1x1xf32>
    %290 = arith.mulf %289, %261 : vector<1x1x1xf32>
    %291 = vector.extract_strided_slice %58 {offsets = [4, 0, 0, 0], sizes = [1, 1, 3, 8], strides = [1, 1, 1, 1]} : vector<8x1x3x8xf32> to vector<1x1x3x8xf32>
    %292 = vector.shape_cast %291 : vector<1x1x3x8xf32> to vector<1x3x8xf32>
    %293 = vector.shape_cast %18 : vector<3x8xf32> to vector<1x3x8xf32>
    %294 = vector.broadcast %290 : vector<1x1x1xf32> to vector<1x3x8xf32>
    %295 = arith.mulf %293, %294 : vector<1x3x8xf32>
    %296 = arith.addf %292, %295 : vector<1x3x8xf32>
    %297 = arith.addf %246, %296 : vector<1x3x8xf32>
    %cst_46 = arith.constant 5.000000e-01 : f32
    %298 = vector.broadcast %cst_46 : f32 to vector<1x3x8xf32>
    %299 = arith.cmpf oge, %297, %298 : vector<1x3x8xf32>
    %300 = arith.extui %299 : vector<1x3x8xi1> to vector<1x3x8xi32>
    %301 = arith.sitofp %300 : vector<1x3x8xi32> to vector<1x3x8xf32>
    %cst_47 = arith.constant 1.000000e+00 : f32
    %302 = vector.broadcast %cst_47 : f32 to vector<1x3x8xf32>
    %303 = arith.subf %302, %301 : vector<1x3x8xf32>
    %304 = arith.mulf %297, %303 : vector<1x3x8xf32>
    %cst_48 = arith.constant dense<0.000000e+00> : vector<1x3xf32>
    %305 = vector.multi_reduction <add>, %301, %cst_48 [2] : vector<1x3x8xf32> to vector<1x3xf32>
    %306 = vector.shape_cast %305 : vector<1x3xf32> to vector<1x3x1xf32>
    %307 = vector.extract_strided_slice %306 {offsets = [0, 0, 0], sizes = [1, 1, 1], strides = [1, 1, 1]} : vector<1x3x1xf32> to vector<1x1x1xf32>
    %308 = vector.extract_strided_slice %306 {offsets = [0, 1, 0], sizes = [1, 1, 1], strides = [1, 1, 1]} : vector<1x3x1xf32> to vector<1x1x1xf32>
    %309 = vector.extract_strided_slice %306 {offsets = [0, 2, 0], sizes = [1, 1, 1], strides = [1, 1, 1]} : vector<1x3x1xf32> to vector<1x1x1xf32>
    %310 = vector.broadcast %1 : f32 to vector<1x1x1xf32>
    %311 = arith.mulf %310, %308 : vector<1x1x1xf32>
    %312 = vector.broadcast %3 : f32 to vector<1x1x1xf32>
    %313 = arith.mulf %312, %309 : vector<1x1x1xf32>
    %314 = arith.addf %311, %313 : vector<1x1x1xf32>
    %315 = arith.addf %264, %314 : vector<1x1x1xf32>
    %cst_49 = arith.constant 5.000000e-01 : f32
    %316 = vector.broadcast %cst_49 : f32 to vector<1x1x1xf32>
    %317 = arith.cmpf oge, %315, %316 : vector<1x1x1xf32>
    %318 = arith.extui %317 : vector<1x1x1xi1> to vector<1x1x1xi32>
    %319 = arith.sitofp %318 : vector<1x1x1xi32> to vector<1x1x1xf32>
    %cst_50 = arith.constant 1.000000e+00 : f32
    %320 = vector.broadcast %cst_50 : f32 to vector<1x1x1xf32>
    %321 = arith.subf %320, %319 : vector<1x1x1xf32>
    %322 = arith.mulf %315, %321 : vector<1x1x1xf32>
    %323 = vector.broadcast %1 : f32 to vector<1x1x1xf32>
    %324 = arith.mulf %323, %307 : vector<1x1x1xf32>
    %325 = vector.broadcast %1 : f32 to vector<1x1x1xf32>
    %326 = arith.mulf %325, %319 : vector<1x1x1xf32>
    %327 = arith.addf %324, %326 : vector<1x1x1xf32>
    %328 = vector.broadcast %3 : f32 to vector<1x1x1xf32>
    %329 = arith.mulf %328, %309 : vector<1x1x1xf32>
    %330 = arith.addf %327, %329 : vector<1x1x1xf32>
    %331 = arith.addf %280, %330 : vector<1x1x1xf32>
    %cst_51 = arith.constant 5.000000e-01 : f32
    %332 = vector.broadcast %cst_51 : f32 to vector<1x1x1xf32>
    %333 = arith.cmpf oge, %331, %332 : vector<1x1x1xf32>
    %334 = arith.extui %333 : vector<1x1x1xi1> to vector<1x1x1xi32>
    %335 = arith.sitofp %334 : vector<1x1x1xi32> to vector<1x1x1xf32>
    %cst_52 = arith.constant 1.000000e+00 : f32
    %336 = vector.broadcast %cst_52 : f32 to vector<1x1x1xf32>
    %337 = arith.subf %336, %335 : vector<1x1x1xf32>
    %338 = arith.mulf %331, %337 : vector<1x1x1xf32>
    %339 = vector.shape_cast %25 : vector<3x8xf32> to vector<1x3x8xf32>
    %340 = vector.broadcast %319 : vector<1x1x1xf32> to vector<1x3x8xf32>
    %341 = arith.mulf %339, %340 : vector<1x3x8xf32>
    %342 = arith.addf %301, %341 : vector<1x3x8xf32>
    %343 = vector.shape_cast %32 : vector<3x8xf32> to vector<1x3x8xf32>
    %344 = vector.broadcast %335 : vector<1x1x1xf32> to vector<1x3x8xf32>
    %345 = arith.mulf %343, %344 : vector<1x3x8xf32>
    %346 = arith.addf %342, %345 : vector<1x3x8xf32>
    %347 = vector.broadcast %5 : f32 to vector<1x1x1xf32>
    %348 = arith.mulf %347, %319 : vector<1x1x1xf32>
    %349 = vector.extract_strided_slice %58 {offsets = [5, 0, 0, 0], sizes = [1, 1, 3, 8], strides = [1, 1, 1, 1]} : vector<8x1x3x8xf32> to vector<1x1x3x8xf32>
    %350 = vector.shape_cast %349 : vector<1x1x3x8xf32> to vector<1x3x8xf32>
    %351 = vector.shape_cast %18 : vector<3x8xf32> to vector<1x3x8xf32>
    %352 = vector.broadcast %348 : vector<1x1x1xf32> to vector<1x3x8xf32>
    %353 = arith.mulf %351, %352 : vector<1x3x8xf32>
    %354 = arith.addf %350, %353 : vector<1x3x8xf32>
    %355 = arith.addf %304, %354 : vector<1x3x8xf32>
    %cst_53 = arith.constant 5.000000e-01 : f32
    %356 = vector.broadcast %cst_53 : f32 to vector<1x3x8xf32>
    %357 = arith.cmpf oge, %355, %356 : vector<1x3x8xf32>
    %358 = arith.extui %357 : vector<1x3x8xi1> to vector<1x3x8xi32>
    %359 = arith.sitofp %358 : vector<1x3x8xi32> to vector<1x3x8xf32>
    %cst_54 = arith.constant 1.000000e+00 : f32
    %360 = vector.broadcast %cst_54 : f32 to vector<1x3x8xf32>
    %361 = arith.subf %360, %359 : vector<1x3x8xf32>
    %362 = arith.mulf %355, %361 : vector<1x3x8xf32>
    %cst_55 = arith.constant dense<0.000000e+00> : vector<1x3xf32>
    %363 = vector.multi_reduction <add>, %359, %cst_55 [2] : vector<1x3x8xf32> to vector<1x3xf32>
    %364 = vector.shape_cast %363 : vector<1x3xf32> to vector<1x3x1xf32>
    %365 = vector.extract_strided_slice %364 {offsets = [0, 0, 0], sizes = [1, 1, 1], strides = [1, 1, 1]} : vector<1x3x1xf32> to vector<1x1x1xf32>
    %366 = vector.extract_strided_slice %364 {offsets = [0, 1, 0], sizes = [1, 1, 1], strides = [1, 1, 1]} : vector<1x3x1xf32> to vector<1x1x1xf32>
    %367 = vector.extract_strided_slice %364 {offsets = [0, 2, 0], sizes = [1, 1, 1], strides = [1, 1, 1]} : vector<1x3x1xf32> to vector<1x1x1xf32>
    %368 = vector.broadcast %1 : f32 to vector<1x1x1xf32>
    %369 = arith.mulf %368, %366 : vector<1x1x1xf32>
    %370 = vector.broadcast %3 : f32 to vector<1x1x1xf32>
    %371 = arith.mulf %370, %367 : vector<1x1x1xf32>
    %372 = arith.addf %369, %371 : vector<1x1x1xf32>
    %373 = arith.addf %322, %372 : vector<1x1x1xf32>
    %cst_56 = arith.constant 5.000000e-01 : f32
    %374 = vector.broadcast %cst_56 : f32 to vector<1x1x1xf32>
    %375 = arith.cmpf oge, %373, %374 : vector<1x1x1xf32>
    %376 = arith.extui %375 : vector<1x1x1xi1> to vector<1x1x1xi32>
    %377 = arith.sitofp %376 : vector<1x1x1xi32> to vector<1x1x1xf32>
    %cst_57 = arith.constant 1.000000e+00 : f32
    %378 = vector.broadcast %cst_57 : f32 to vector<1x1x1xf32>
    %379 = arith.subf %378, %377 : vector<1x1x1xf32>
    %380 = arith.mulf %373, %379 : vector<1x1x1xf32>
    %381 = vector.broadcast %1 : f32 to vector<1x1x1xf32>
    %382 = arith.mulf %381, %365 : vector<1x1x1xf32>
    %383 = vector.broadcast %1 : f32 to vector<1x1x1xf32>
    %384 = arith.mulf %383, %377 : vector<1x1x1xf32>
    %385 = arith.addf %382, %384 : vector<1x1x1xf32>
    %386 = vector.broadcast %3 : f32 to vector<1x1x1xf32>
    %387 = arith.mulf %386, %367 : vector<1x1x1xf32>
    %388 = arith.addf %385, %387 : vector<1x1x1xf32>
    %389 = arith.addf %338, %388 : vector<1x1x1xf32>
    %cst_58 = arith.constant 5.000000e-01 : f32
    %390 = vector.broadcast %cst_58 : f32 to vector<1x1x1xf32>
    %391 = arith.cmpf oge, %389, %390 : vector<1x1x1xf32>
    %392 = arith.extui %391 : vector<1x1x1xi1> to vector<1x1x1xi32>
    %393 = arith.sitofp %392 : vector<1x1x1xi32> to vector<1x1x1xf32>
    %cst_59 = arith.constant 1.000000e+00 : f32
    %394 = vector.broadcast %cst_59 : f32 to vector<1x1x1xf32>
    %395 = arith.subf %394, %393 : vector<1x1x1xf32>
    %396 = arith.mulf %389, %395 : vector<1x1x1xf32>
    %397 = vector.shape_cast %25 : vector<3x8xf32> to vector<1x3x8xf32>
    %398 = vector.broadcast %377 : vector<1x1x1xf32> to vector<1x3x8xf32>
    %399 = arith.mulf %397, %398 : vector<1x3x8xf32>
    %400 = arith.addf %359, %399 : vector<1x3x8xf32>
    %401 = vector.shape_cast %32 : vector<3x8xf32> to vector<1x3x8xf32>
    %402 = vector.broadcast %393 : vector<1x1x1xf32> to vector<1x3x8xf32>
    %403 = arith.mulf %401, %402 : vector<1x3x8xf32>
    %404 = arith.addf %400, %403 : vector<1x3x8xf32>
    %405 = vector.broadcast %5 : f32 to vector<1x1x1xf32>
    %406 = arith.mulf %405, %377 : vector<1x1x1xf32>
    %407 = vector.extract_strided_slice %58 {offsets = [6, 0, 0, 0], sizes = [1, 1, 3, 8], strides = [1, 1, 1, 1]} : vector<8x1x3x8xf32> to vector<1x1x3x8xf32>
    %408 = vector.shape_cast %407 : vector<1x1x3x8xf32> to vector<1x3x8xf32>
    %409 = vector.shape_cast %18 : vector<3x8xf32> to vector<1x3x8xf32>
    %410 = vector.broadcast %406 : vector<1x1x1xf32> to vector<1x3x8xf32>
    %411 = arith.mulf %409, %410 : vector<1x3x8xf32>
    %412 = arith.addf %408, %411 : vector<1x3x8xf32>
    %413 = arith.addf %362, %412 : vector<1x3x8xf32>
    %cst_60 = arith.constant 5.000000e-01 : f32
    %414 = vector.broadcast %cst_60 : f32 to vector<1x3x8xf32>
    %415 = arith.cmpf oge, %413, %414 : vector<1x3x8xf32>
    %416 = arith.extui %415 : vector<1x3x8xi1> to vector<1x3x8xi32>
    %417 = arith.sitofp %416 : vector<1x3x8xi32> to vector<1x3x8xf32>
    %cst_61 = arith.constant 1.000000e+00 : f32
    %418 = vector.broadcast %cst_61 : f32 to vector<1x3x8xf32>
    %419 = arith.subf %418, %417 : vector<1x3x8xf32>
    %420 = arith.mulf %413, %419 : vector<1x3x8xf32>
    %cst_62 = arith.constant dense<0.000000e+00> : vector<1x3xf32>
    %421 = vector.multi_reduction <add>, %417, %cst_62 [2] : vector<1x3x8xf32> to vector<1x3xf32>
    %422 = vector.shape_cast %421 : vector<1x3xf32> to vector<1x3x1xf32>
    %423 = vector.extract_strided_slice %422 {offsets = [0, 0, 0], sizes = [1, 1, 1], strides = [1, 1, 1]} : vector<1x3x1xf32> to vector<1x1x1xf32>
    %424 = vector.extract_strided_slice %422 {offsets = [0, 1, 0], sizes = [1, 1, 1], strides = [1, 1, 1]} : vector<1x3x1xf32> to vector<1x1x1xf32>
    %425 = vector.extract_strided_slice %422 {offsets = [0, 2, 0], sizes = [1, 1, 1], strides = [1, 1, 1]} : vector<1x3x1xf32> to vector<1x1x1xf32>
    %426 = vector.broadcast %1 : f32 to vector<1x1x1xf32>
    %427 = arith.mulf %426, %424 : vector<1x1x1xf32>
    %428 = vector.broadcast %3 : f32 to vector<1x1x1xf32>
    %429 = arith.mulf %428, %425 : vector<1x1x1xf32>
    %430 = arith.addf %427, %429 : vector<1x1x1xf32>
    %431 = arith.addf %380, %430 : vector<1x1x1xf32>
    %cst_63 = arith.constant 5.000000e-01 : f32
    %432 = vector.broadcast %cst_63 : f32 to vector<1x1x1xf32>
    %433 = arith.cmpf oge, %431, %432 : vector<1x1x1xf32>
    %434 = arith.extui %433 : vector<1x1x1xi1> to vector<1x1x1xi32>
    %435 = arith.sitofp %434 : vector<1x1x1xi32> to vector<1x1x1xf32>
    %cst_64 = arith.constant 1.000000e+00 : f32
    %436 = vector.broadcast %cst_64 : f32 to vector<1x1x1xf32>
    %437 = arith.subf %436, %435 : vector<1x1x1xf32>
    %438 = arith.mulf %431, %437 : vector<1x1x1xf32>
    %439 = vector.broadcast %1 : f32 to vector<1x1x1xf32>
    %440 = arith.mulf %439, %423 : vector<1x1x1xf32>
    %441 = vector.broadcast %1 : f32 to vector<1x1x1xf32>
    %442 = arith.mulf %441, %435 : vector<1x1x1xf32>
    %443 = arith.addf %440, %442 : vector<1x1x1xf32>
    %444 = vector.broadcast %3 : f32 to vector<1x1x1xf32>
    %445 = arith.mulf %444, %425 : vector<1x1x1xf32>
    %446 = arith.addf %443, %445 : vector<1x1x1xf32>
    %447 = arith.addf %396, %446 : vector<1x1x1xf32>
    %cst_65 = arith.constant 5.000000e-01 : f32
    %448 = vector.broadcast %cst_65 : f32 to vector<1x1x1xf32>
    %449 = arith.cmpf oge, %447, %448 : vector<1x1x1xf32>
    %450 = arith.extui %449 : vector<1x1x1xi1> to vector<1x1x1xi32>
    %451 = arith.sitofp %450 : vector<1x1x1xi32> to vector<1x1x1xf32>
    %cst_66 = arith.constant 1.000000e+00 : f32
    %452 = vector.broadcast %cst_66 : f32 to vector<1x1x1xf32>
    %453 = arith.subf %452, %451 : vector<1x1x1xf32>
    %454 = arith.mulf %447, %453 : vector<1x1x1xf32>
    %455 = vector.shape_cast %25 : vector<3x8xf32> to vector<1x3x8xf32>
    %456 = vector.broadcast %435 : vector<1x1x1xf32> to vector<1x3x8xf32>
    %457 = arith.mulf %455, %456 : vector<1x3x8xf32>
    %458 = arith.addf %417, %457 : vector<1x3x8xf32>
    %459 = vector.shape_cast %32 : vector<3x8xf32> to vector<1x3x8xf32>
    %460 = vector.broadcast %451 : vector<1x1x1xf32> to vector<1x3x8xf32>
    %461 = arith.mulf %459, %460 : vector<1x3x8xf32>
    %462 = arith.addf %458, %461 : vector<1x3x8xf32>
    %463 = vector.broadcast %5 : f32 to vector<1x1x1xf32>
    %464 = arith.mulf %463, %435 : vector<1x1x1xf32>
    %465 = vector.extract_strided_slice %58 {offsets = [7, 0, 0, 0], sizes = [1, 1, 3, 8], strides = [1, 1, 1, 1]} : vector<8x1x3x8xf32> to vector<1x1x3x8xf32>
    %466 = vector.shape_cast %465 : vector<1x1x3x8xf32> to vector<1x3x8xf32>
    %467 = vector.shape_cast %18 : vector<3x8xf32> to vector<1x3x8xf32>
    %468 = vector.broadcast %464 : vector<1x1x1xf32> to vector<1x3x8xf32>
    %469 = arith.mulf %467, %468 : vector<1x3x8xf32>
    %470 = arith.addf %466, %469 : vector<1x3x8xf32>
    %471 = arith.addf %420, %470 : vector<1x3x8xf32>
    %cst_67 = arith.constant 5.000000e-01 : f32
    %472 = vector.broadcast %cst_67 : f32 to vector<1x3x8xf32>
    %473 = arith.cmpf oge, %471, %472 : vector<1x3x8xf32>
    %474 = arith.extui %473 : vector<1x3x8xi1> to vector<1x3x8xi32>
    %475 = arith.sitofp %474 : vector<1x3x8xi32> to vector<1x3x8xf32>
    %cst_68 = arith.constant dense<0.000000e+00> : vector<1x3xf32>
    %476 = vector.multi_reduction <add>, %475, %cst_68 [2] : vector<1x3x8xf32> to vector<1x3xf32>
    %477 = vector.shape_cast %476 : vector<1x3xf32> to vector<1x3x1xf32>
    %478 = vector.extract_strided_slice %477 {offsets = [0, 0, 0], sizes = [1, 1, 1], strides = [1, 1, 1]} : vector<1x3x1xf32> to vector<1x1x1xf32>
    %479 = vector.extract_strided_slice %477 {offsets = [0, 1, 0], sizes = [1, 1, 1], strides = [1, 1, 1]} : vector<1x3x1xf32> to vector<1x1x1xf32>
    %480 = vector.extract_strided_slice %477 {offsets = [0, 2, 0], sizes = [1, 1, 1], strides = [1, 1, 1]} : vector<1x3x1xf32> to vector<1x1x1xf32>
    %481 = vector.broadcast %1 : f32 to vector<1x1x1xf32>
    %482 = arith.mulf %481, %479 : vector<1x1x1xf32>
    %483 = vector.broadcast %3 : f32 to vector<1x1x1xf32>
    %484 = arith.mulf %483, %480 : vector<1x1x1xf32>
    %485 = arith.addf %482, %484 : vector<1x1x1xf32>
    %486 = arith.addf %438, %485 : vector<1x1x1xf32>
    %cst_69 = arith.constant 5.000000e-01 : f32
    %487 = vector.broadcast %cst_69 : f32 to vector<1x1x1xf32>
    %488 = arith.cmpf oge, %486, %487 : vector<1x1x1xf32>
    %489 = arith.extui %488 : vector<1x1x1xi1> to vector<1x1x1xi32>
    %490 = arith.sitofp %489 : vector<1x1x1xi32> to vector<1x1x1xf32>
    %491 = vector.broadcast %1 : f32 to vector<1x1x1xf32>
    %492 = arith.mulf %491, %478 : vector<1x1x1xf32>
    %493 = vector.broadcast %1 : f32 to vector<1x1x1xf32>
    %494 = arith.mulf %493, %490 : vector<1x1x1xf32>
    %495 = arith.addf %492, %494 : vector<1x1x1xf32>
    %496 = vector.broadcast %3 : f32 to vector<1x1x1xf32>
    %497 = arith.mulf %496, %480 : vector<1x1x1xf32>
    %498 = arith.addf %495, %497 : vector<1x1x1xf32>
    %499 = arith.addf %454, %498 : vector<1x1x1xf32>
    %cst_70 = arith.constant 5.000000e-01 : f32
    %500 = vector.broadcast %cst_70 : f32 to vector<1x1x1xf32>
    %501 = arith.cmpf oge, %499, %500 : vector<1x1x1xf32>
    %502 = arith.extui %501 : vector<1x1x1xi1> to vector<1x1x1xi32>
    %503 = arith.sitofp %502 : vector<1x1x1xi32> to vector<1x1x1xf32>
    %504 = vector.shape_cast %25 : vector<3x8xf32> to vector<1x3x8xf32>
    %505 = vector.broadcast %490 : vector<1x1x1xf32> to vector<1x3x8xf32>
    %506 = arith.mulf %504, %505 : vector<1x3x8xf32>
    %507 = arith.addf %475, %506 : vector<1x3x8xf32>
    %508 = vector.shape_cast %32 : vector<3x8xf32> to vector<1x3x8xf32>
    %509 = vector.broadcast %503 : vector<1x1x1xf32> to vector<1x3x8xf32>
    %510 = arith.mulf %508, %509 : vector<1x3x8xf32>
    %511 = arith.addf %507, %510 : vector<1x3x8xf32>
    %512 = vector.shape_cast %114 : vector<1x3x8xf32> to vector<1x1x3x8xf32>
    %513 = vector.shape_cast %172 : vector<1x3x8xf32> to vector<1x1x3x8xf32>
    %514 = vector.shape_cast %230 : vector<1x3x8xf32> to vector<1x1x3x8xf32>
    %515 = vector.shape_cast %288 : vector<1x3x8xf32> to vector<1x1x3x8xf32>
    %516 = vector.shape_cast %346 : vector<1x3x8xf32> to vector<1x1x3x8xf32>
    %517 = vector.shape_cast %404 : vector<1x3x8xf32> to vector<1x1x3x8xf32>
    %518 = vector.shape_cast %462 : vector<1x3x8xf32> to vector<1x1x3x8xf32>
    %519 = vector.shape_cast %511 : vector<1x3x8xf32> to vector<1x1x3x8xf32>
    %520 = tpu.concatenate %512, %513, %514, %515, %516, %517, %518, %519 in 0 : vector<1x1x3x8xf32>, vector<1x1x3x8xf32>, vector<1x1x3x8xf32>, vector<1x1x3x8xf32>, vector<1x1x3x8xf32>, vector<1x1x3x8xf32>, vector<1x1x3x8xf32>, vector<1x1x3x8xf32> -> vector<8x1x3x8xf32>
    %c0_71 = arith.constant 0 : index
    %c0_72 = arith.constant 0 : index
    %c0_73 = arith.constant 0 : index
    %c0_74 = arith.constant 0 : index
    %521 = vector.load %arg3[%c0_71, %c0_72, %c0_73, %c0_74] : memref<8x1x3x8xf32, #tpu.memory_space<vmem>>, vector<8x1x3x8xf32>
    tpu.vector_store %arg3[%c0_71, %c0_72, %c0_73, %c0_74], %520 {strides = array<i32>} : memref<8x1x3x8xf32, #tpu.memory_space<vmem>>, vector<8x1x3x8xf32>,
    return
  }
}

</mosaic_0001>

<bundles_post_ra>
// kernel: basalganglia_forward_seq.1
= control target key start
LH: loop header
LB: loop body
LE: loop exit
PB: predicated region body
PF: predicated region fallthrough
CT: control target
= control target key end

     0   :  { %8 = vsyncpa [#allocation3], 0  ;;  %s1057_s0 = inlined_call_operand.vmem [shape: f32[2], index: 0, kind: input, shape index: {}]   ;;  %s1058_s1 = inlined_call_operand.vmem [shape: f32[8,1,8], index: 1, kind: input, shape index: {}]   ;;  %s1059_s2 = inlined_call_operand.vmem [shape: f32[1,4], index: 2, kind: input, shape index: {}]   ;;  %s1060_s3 = inlined_call_operand.vmem [shape: f32[8,1,3,8], index: 3, kind: output, shape index: {}]  }
   0x1   :  { %s15_s14 = sshll.u32 %s1057_s0, 4  ;;  %s16_s14 = int_to_ptr.vmem [resolvable:$true] %s15_s14 }
   0x2   :  { %s740_s15 = scalar_lea.vmem %s16_s14, 16  ;;  %p745_p1 = scmp.lt.s32.totalorder %s16_s14, %s16_s14 }
   0x3   :  { %p741_p0 = scmp.ne.s32.totalorder %s16_s14, %s740_s15  ;;  %p746_p2 = scmp.lt.s32.totalorder %s740_s15, %s740_s15 }
   0x5   :  { %p747_p3 = por %p746_p2, %p745_p1 }
   0x7   :  { %p748_p4 = pnand %p747_p3, %p741_p0 }
   0x9   :  { %751 = shalt.err (!%p748_p4)
}
   0xa   :  { %s754_s16 = smov [#allocation2]  }
   0xb   :  { %18 = dma.vmem_to_smem %s16_s14, 16, %s754_s16, [#allocation3]  }
   0xc   :  { %752 = dma.done.wait [#allocation3], 16  }
   0xd   :  { %753 = vsyncadd [#allocation3], 4294967280 }
   0xe   :  { %26 = sfence }
   0xf   :  { %v53_v0 = vld [vmem:[%s1059_s2] sm:$0x1]  ;;  %vm54_vm0 = vcmask 24576   ;;  %s782_s19 = sld [smem:[#allocation2]]  ;;  %vm77_vm1 = vcmask 57344   ;;  %s792_s21 = sld [smem:[#allocation2 + $0x1]]  ;;  %v33_v6 = vlaneseq }
  0x10   :  { %v55_v1 = vsel %vm54_vm0, %v53_v0, 0.0  ;;  %v60_v2 = vld [vmem:[%s1058_s1] sm:$0x1]  ;;  %v755_v14 = vmov 0.0   ;;  %v61_v24 = vld [vmem:[%s1058_s1 + $0x1] sm:$0x1] }
  0x11   :  { %56 = vadd.xlane.f32.xlu0 %v55_v1  ;;  %v795_v7 = vshrl.u32 %v33_v6, 7  ;;  %v797_v8 = vand.u32 127, %v33_v6  ;;  %vm218_vm6 = vcmask 59392   ;;  %v62_v30 = vld [vmem:[%s1058_s1 + $0x2] sm:$0x1] }
  0x13   :  { %v802_v11 = vsub.s32 0, %v795_v7  ;;  %vm37_vm2 = vcmp.lt.s32.totalorder %v795_v7, 2  ;;  %vm40_vm3 = vcmp.eq.s32.totalorder %v795_v7, 2  ;;  %vm41_vm4 = vcmp.eq.s32.totalorder %v797_v8, 0 }
  0x14   :  { %v809_v15 = vsel %vm37_vm2, 1.0, %v755_v14  ;;  %vm42_vm5 = vmand %vm40_vm3, %vm41_vm4  ;;  %vm45_vm10 = vcmp.eq.s32.totalorder %v797_v8, 1  ;;  %vm49_vm12 = vcmp.eq.s32.totalorder %v797_v8, 2 }
  0x15   :  { %v788_v3 = vstv %s782_s19  ;;  %s31_s2 = smul.f32 0.5, %s792_s21  ;;  %v817_v20 = vsel %vm42_vm5, 1.0, %v755_v14  ;;  %v846_v34 = vstv %s792_s21  ;;  %vm46_vm11 = vmand %vm40_vm3, %vm45_vm10 }
  0x16   :  { %v69_v4 = vmul.f32 %v788_v3, %v60_v2  ;;  %v70_v26 = vmul.f32 %v788_v3, %v61_v24  ;;  %v838_v31 = vmul.f32 %v788_v3, %v62_v30  ;;  %s29_s26 = smul.f32 0.5, %s782_s19  ;;  %v865_v58 = vsel %vm46_vm11, 1.0, %v755_v14  ;;  %vm50_vm13 = vmand %vm40_vm3, %vm49_vm12 }
  0x17   :  { %v58_v10 = vstv %s31_s2  ;;  %s32_s28 = smul.f32 4.0, %s31_s2  ;;  %v873_v63 = vsel %vm50_vm13, 1.0, %v755_v14 }
  0x18   :  { %v78_v5 = vsel %vm77_vm1, %v69_v4, 0.0  ;;  %v113_v12 = vrot.slane %v69_v4, %v802_v11  ;;  %v81_v29 = vsel %vm77_vm1, %v70_v26, 0.0  ;;  %v84_v32 = vsel %vm77_vm1, %v838_v31, 0.0  ;;  %s30_s27 = smul.f32 2.0, %s29_s26 }
  0x19   :  { %79 = vadd.xlane.f32.xlu0 %v78_v5  ;;  %v854_v44 = vstv %s32_s28  ;;  %v117_v56 = vrot.slane %v70_v26, %v802_v11 }
  0x1a   :  { %v150_v18 = vmul.f32 %v809_v15, %v113_v12  ;;  %v843_v33 = vstv %s30_s27 }
  0x1b   :  { %v151_v60 = vmul.f32 %v809_v15, %v117_v56 }
  0x9e   :  { %v57_v9 = vpop.xlane.xlu0 %56 }
  0x9f   :  { %v59_v13 = vmul.f32 %v58_v10, %v57_v9 }
  0xa1   :  { %v209_v17 = vrot.slane %v59_v13, %v802_v11 }
  0xa3   :  { %v210_v22 = vmul.f32 %v817_v20, %v209_v17  ;;  %v63_v17 = vld [vmem:[%s1058_s1 + $0x3] sm:$0x1] }
  0xa6   :  { %v80_v16 = vpop.xlane.xlu0 %79 }
  0xa7   :  { %v161_v19 = vrot.slane %v80_v16, %v802_v11 }
  0xa9   :  { %v190_v21 = vmul.f32 %v817_v20, %v161_v19 }
  0xab   :  { %v198_v23 = vadd.f32 %v190_v21, %v150_v18  ;;  %v890_v18 = vmul.f32 %v788_v3, %v63_v17 }
  0xad   :  { %v824_v25 = vadd.f32 %v210_v22, %v198_v23  ;;  %v87_v19 = vsel %vm77_vm1, %v890_v18, 0.0 }
  0xaf   :  { %vm213_vm7 = vcmp.ge.f32.partialorder %v824_v25, 0.5 }
  0xb0   :  { %v829_v27 = vsel %vm213_vm7, 1.0, %v755_v14 }
  0xb1   :  { %v219_v28 = vsel %vm218_vm6, %v829_v27, 0.0  ;;  %v216_v0 = vsub.f32 1.0, %v829_v27 }
  0xb2   :  { %220 = vadd.xlane.f32.xlu1 %v219_v28 }
  0xb3   :  { %v217_v9 = vmul.f32 %v216_v0, %v824_v25 }
  0xb6   :  { %82 = vadd.xlane.f32.xlu1 %v81_v29 }
  0xba   :  { %85 = vadd.xlane.f32.xlu1 %v84_v32 }
  0xbe   :  { %88 = vadd.xlane.f32.xlu1 %v87_v19 }
 0x13f   :  { %v221_v35 = vpop.xlane.xlu1 %220 }
 0x140   :  { %v225_v36 = vmul.f32 %v843_v33, %v221_v35  ;;  %v223_v37 = vmul.f32 %v846_v34, %v221_v35 }
 0x142   :  { %v227_v38 = vrot.slane %v225_v36, 1  ;;  %v241_v48 = vrot.slane %v225_v36, 2 }
 0x143   :  { %v83_v55 = vpop.xlane.xlu1 %82 }
 0x144   :  { %v229_v39 = vadd.f32 %v227_v38, %v223_v37  ;;  %v165_v57 = vrot.slane %v83_v55, %v802_v11 }
 0x146   :  { %vm231_vm8 = vcmp.ge.f32.partialorder %v229_v39, 0.5  ;;  %v191_v61 = vmul.f32 %v817_v20, %v165_v57 }
 0x147   :  { %v669_v40 = vsel %vm231_vm8, 1.0, %v755_v14 }
 0x148   :  { %v234_v41 = vsub.f32 1.0, %v669_v40  ;;  %v236_v42 = vmul.f32 %v669_v40, %v846_v34  ;;  %v251_v43 = vrot.slane %v669_v40, 1  ;;  %v264_v49 = vmul.f32 %v669_v40, %v854_v44 }
 0x149   :  { %v199_v1 = vadd.f32 %v191_v61, %v151_v60 }
 0x14a   :  { %v235_v45 = vmul.f32 %v234_v41, %v229_v39  ;;  %v238_v46 = vrot.slane %v236_v42, 1  ;;  %692 = vpush %v251_v43  ;;  %v266_v52 = vrot.slane %v264_v49, 1 }
 0x14c   :  { %v240_v47 = vadd.f32 %v238_v46, %v223_v37  ;;  %v86_v46 = vpop.xlane.xlu1 %85 }
 0x14e   :  { %v243_v50 = vadd.f32 %v241_v48, %v240_v47  ;;  %v121_v47 = vrot.slane %v838_v31, %v802_v11  ;;  %v169_v48 = vrot.slane %v86_v46, %v802_v11 }
 0x150   :  { %vm245_vm9 = vcmp.ge.f32.partialorder %v243_v50, 0.5 }
 0x151   :  { %v670_v51 = vsel %vm245_vm9, 1.0, %v755_v14 }
 0x152   :  { %v248_v53 = vsub.f32 1.0, %v670_v51  ;;  %694 = vpush %v670_v51  ;;  %v192_v51 = vmul.f32 %v817_v20, %v169_v48 }
 0x153   :  { %696 = vpush %v266_v52 }
 0x154   :  { %v249_v54 = vmul.f32 %v248_v53, %v243_v50  ;;  %v152_v50 = vmul.f32 %v809_v15, %v121_v47 }
 0x17b   :  { %s693_s29 = spop %692 }
 0x17c   :  { %v253_v59 = vstv %s693_s29 }
 0x17d   :  { %v255_v62 = vmul.f32 %v865_v58, %v253_v59 }
 0x17f   :  { %v256_v4 = vadd.f32 %v829_v27, %v255_v62 }
 0x183   :  { %s695_s30 = spop %694 }
 0x184   :  { %v259_v2 = vstv %s695_s30  ;;  %s697_s4 = spop %696 }
 0x185   :  { %v261_v5 = vmul.f32 %v873_v63, %v259_v2  ;;  %v268_v6 = vstv %s697_s4 }
 0x186   :  { %v270_v7 = vmul.f32 %v817_v20, %v268_v6 }
 0x187   :  { %v262_v8 = vadd.f32 %v261_v5, %v256_v4  ;;  %v64_v4 = vld [vmem:[%s1058_s1 + $0x4] sm:$0x1] }
 0x188   :  { %v271_v10 = vadd.f32 %v270_v7, %v199_v1  ;;  %v918_v5 = vmul.f32 %v788_v3, %v64_v4 }
 0x189   :  { %650 = vst.msk [vmem:[%s1060_s3] sm:$0x7] %vm218_vm6, %v262_v8 }
 0x18a   :  { %v272_v12 = vadd.f32 %v271_v10, %v217_v9  ;;  %v90_v6 = vsel %vm77_vm1, %v918_v5, 0.0 }
 0x18b   :  { %91 = vadd.xlane.f32.xlu1 %v90_v6 }
 0x18c   :  { %vm273_vm14 = vcmp.ge.f32.partialorder %v272_v12, 0.5 }
 0x18d   :  { %v671_v13 = vsel %vm273_vm14, 1.0, %v755_v14 }
 0x18e   :  { %v278_v16 = vsel %vm218_vm6, %v671_v13, 0.0  ;;  %v276_v53 = vsub.f32 1.0, %v671_v13 }
 0x18f   :  { %279 = vadd.xlane.f32.xlu0 %v278_v16 }
 0x190   :  { %v277_v61 = vmul.f32 %v276_v53, %v272_v12 }
 0x21c   :  { %v280_v21 = vpop.xlane.xlu0 %279 }
 0x21d   :  { %v282_v22 = vmul.f32 %v280_v21, %v843_v33  ;;  %v281_v23 = vmul.f32 %v280_v21, %v846_v34 }
 0x21f   :  { %v284_v24 = vrot.slane %v282_v22, 1  ;;  %v298_v37 = vrot.slane %v282_v22, 2 }
 0x221   :  { %v286_v25 = vadd.f32 %v284_v24, %v281_v23 }
 0x223   :  { %v287_v26 = vadd.f32 %v286_v25, %v235_v45 }
 0x225   :  { %vm288_vm15 = vcmp.ge.f32.partialorder %v287_v26, 0.5 }
 0x226   :  { %v672_v27 = vsel %vm288_vm15, 1.0, %v755_v14 }
 0x227   :  { %v293_v28 = vmul.f32 %v672_v27, %v846_v34  ;;  %v308_v29 = vrot.slane %v672_v27, 1  ;;  %v291_v30 = vsub.f32 1.0, %v672_v27  ;;  %v320_v39 = vmul.f32 %v672_v27, %v854_v44 }
 0x229   :  { %v295_v32 = vrot.slane %v293_v28, 1  ;;  %698 = vpush %v308_v29  ;;  %v292_v35 = vmul.f32 %v291_v30, %v287_v26  ;;  %v322_v42 = vrot.slane %v320_v39, 1 }
 0x22b   :  { %v297_v36 = vadd.f32 %v295_v32, %v281_v23 }
 0x22d   :  { %v300_v38 = vadd.f32 %v298_v37, %v297_v36  ;;  %v89_v36 = vpop.xlane.xlu1 %88  ;;  %v125_v37 = vrot.slane %v890_v18, %v802_v11 }
 0x22f   :  { %v301_v40 = vadd.f32 %v300_v38, %v249_v54  ;;  %v200_v54 = vadd.f32 %v192_v51, %v152_v50  ;;  %v173_v38 = vrot.slane %v89_v36, %v802_v11 }
 0x231   :  { %vm302_vm0 = vcmp.ge.f32.partialorder %v301_v40, 0.5 }
 0x232   :  { %v673_v41 = vsel %vm302_vm0, 1.0, %v755_v14 }
 0x233   :  { %v305_v43 = vsub.f32 1.0, %v673_v41  ;;  %700 = vpush %v673_v41  ;;  %v193_v41 = vmul.f32 %v817_v20, %v173_v38 }
 0x234   :  { %702 = vpush %v322_v42 }
 0x235   :  { %v306_v45 = vmul.f32 %v305_v43, %v301_v40  ;;  %v153_v40 = vmul.f32 %v809_v15, %v125_v37 }
 0x25a   :  { %s699_s9 = spop %698 }
 0x25b   :  { %v310_v49 = vstv %s699_s9 }
 0x25c   :  { %v312_v52 = vmul.f32 %v865_v58, %v310_v49 }
 0x25e   :  { %v313_v56 = vadd.f32 %v671_v13, %v312_v52 }
 0x264   :  { %s701_s10 = spop %700 }
 0x265   :  { %v316_v55 = vstv %s701_s10  ;;  %s703_s11 = spop %702 }
 0x266   :  { %v318_v57 = vmul.f32 %v873_v63, %v316_v55  ;;  %v324_v59 = vstv %s703_s11 }
 0x267   :  { %v326_v31 = vmul.f32 %v817_v20, %v324_v59 }
 0x268   :  { %v319_v60 = vadd.f32 %v318_v57, %v313_v56  ;;  %v65_v56 = vld [vmem:[%s1058_s1 + $0x5] sm:$0x1] }
 0x269   :  { %v327_v62 = vadd.f32 %v326_v31, %v200_v54  ;;  %v946_v57 = vmul.f32 %v788_v3, %v65_v56 }
 0x26a   :  { %651 = vst.msk [vmem:[%s1060_s3 + $0x4] sm:$0x7] %vm218_vm6, %v319_v60 }
 0x26b   :  { %v328_v0 = vadd.f32 %v327_v62, %v277_v61  ;;  %v93_v59 = vsel %vm77_vm1, %v946_v57, 0.0 }
 0x26c   :  { %94 = vadd.xlane.f32.xlu1 %v93_v59 }
 0x26d   :  { %vm329_vm2 = vcmp.ge.f32.partialorder %v328_v0, 0.5 }
 0x26e   :  { %v674_v1 = vsel %vm329_vm2, 1.0, %v755_v14 }
 0x26f   :  { %v334_v2 = vsel %vm218_vm6, %v674_v1, 0.0  ;;  %v332_v43 = vsub.f32 1.0, %v674_v1 }
 0x270   :  { %335 = vadd.xlane.f32.xlu0 %v334_v2 }
 0x271   :  { %v333_v51 = vmul.f32 %v332_v43, %v328_v0 }
 0x2fd   :  { %v336_v7 = vpop.xlane.xlu0 %335 }
 0x2fe   :  { %v338_v8 = vmul.f32 %v336_v7, %v843_v33  ;;  %v337_v9 = vmul.f32 %v336_v7, %v846_v34 }
 0x300   :  { %v340_v10 = vrot.slane %v338_v8, 1  ;;  %v354_v25 = vrot.slane %v338_v8, 2 }
 0x302   :  { %v342_v12 = vadd.f32 %v340_v10, %v337_v9 }
 0x304   :  { %v343_v13 = vadd.f32 %v342_v12, %v292_v35 }
 0x306   :  { %vm344_vm3 = vcmp.ge.f32.partialorder %v343_v13, 0.5 }
 0x307   :  { %v675_v16 = vsel %vm344_vm3, 1.0, %v755_v14 }
 0x308   :  { %v349_v17 = vmul.f32 %v675_v16, %v846_v34  ;;  %v364_v19 = vrot.slane %v675_v16, 1  ;;  %v347_v21 = vsub.f32 1.0, %v675_v16  ;;  %v376_v27 = vmul.f32 %v675_v16, %v854_v44 }
 0x30a   :  { %v351_v22 = vrot.slane %v349_v17, 1  ;;  %704 = vpush %v364_v19  ;;  %v348_v23 = vmul.f32 %v347_v21, %v343_v13  ;;  %v378_v30 = vrot.slane %v376_v27, 1 }
 0x30c   :  { %v353_v24 = vadd.f32 %v351_v22, %v337_v9 }
 0x30e   :  { %v356_v26 = vadd.f32 %v354_v25, %v353_v24  ;;  %v92_v24 = vpop.xlane.xlu1 %91  ;;  %v129_v25 = vrot.slane %v918_v5, %v802_v11 }
 0x310   :  { %v357_v28 = vadd.f32 %v356_v26, %v306_v45  ;;  %v201_v45 = vadd.f32 %v193_v41, %v153_v40  ;;  %v177_v26 = vrot.slane %v92_v24, %v802_v11 }
 0x312   :  { %vm358_vm4 = vcmp.ge.f32.partialorder %v357_v28, 0.5 }
 0x313   :  { %v676_v29 = vsel %vm358_vm4, 1.0, %v755_v14 }
 0x314   :  { %v361_v32 = vsub.f32 1.0, %v676_v29  ;;  %706 = vpush %v676_v29  ;;  %v194_v29 = vmul.f32 %v817_v20, %v177_v26 }
 0x315   :  { %708 = vpush %v378_v30 }
 0x316   :  { %v362_v35 = vmul.f32 %v361_v32, %v357_v28  ;;  %v154_v28 = vmul.f32 %v809_v15, %v129_v25 }
 0x33b   :  { %s705_s16 = spop %704 }
 0x33c   :  { %v366_v39 = vstv %s705_s16 }
 0x33d   :  { %v368_v42 = vmul.f32 %v865_v58, %v366_v39 }
 0x33f   :  { %v369_v47 = vadd.f32 %v674_v1, %v368_v42 }
 0x345   :  { %s707_s17 = spop %706 }
 0x346   :  { %v372_v46 = vstv %s707_s17  ;;  %s709_s18 = spop %708 }
 0x347   :  { %v374_v48 = vmul.f32 %v873_v63, %v372_v46  ;;  %v380_v49 = vstv %s709_s18 }
 0x348   :  { %v382_v18 = vmul.f32 %v817_v20, %v380_v49 }
 0x349   :  { %v375_v50 = vadd.f32 %v374_v48, %v369_v47  ;;  %v66_v47 = vld [vmem:[%s1058_s1 + $0x6] sm:$0x1] }
 0x34a   :  { %v383_v52 = vadd.f32 %v382_v18, %v201_v45  ;;  %v974_v48 = vmul.f32 %v788_v3, %v66_v47 }
 0x34b   :  { %652 = vst.msk [vmem:[%s1060_s3 + $0x8] sm:$0x7] %vm218_vm6, %v375_v50 }
 0x34c   :  { %v384_v53 = vadd.f32 %v383_v52, %v333_v51  ;;  %v96_v49 = vsel %vm77_vm1, %v974_v48, 0.0 }
 0x34d   :  { %97 = vadd.xlane.f32.xlu1 %v96_v49 }
 0x34e   :  { %vm385_vm5 = vcmp.ge.f32.partialorder %v384_v53, 0.5 }
 0x34f   :  { %v677_v54 = vsel %vm385_vm5, 1.0, %v755_v14 }
 0x350   :  { %v390_v55 = vsel %vm218_vm6, %v677_v54, 0.0  ;;  %v388_v32 = vsub.f32 1.0, %v677_v54 }
 0x351   :  { %391 = vadd.xlane.f32.xlu0 %v390_v55 }
 0x352   :  { %v389_v41 = vmul.f32 %v388_v32, %v384_v53 }
 0x3de   :  { %v392_v31 = vpop.xlane.xlu0 %391 }
 0x3df   :  { %v394_v60 = vmul.f32 %v392_v31, %v843_v33  ;;  %v393_v61 = vmul.f32 %v392_v31, %v846_v34 }
 0x3e1   :  { %v396_v62 = vrot.slane %v394_v60, 1  ;;  %v410_v12 = vrot.slane %v394_v60, 2 }
 0x3e3   :  { %v398_v0 = vadd.f32 %v396_v62, %v393_v61 }
 0x3e5   :  { %v399_v1 = vadd.f32 %v398_v0, %v348_v23 }
 0x3e7   :  { %vm400_vm7 = vcmp.ge.f32.partialorder %v399_v1, 0.5 }
 0x3e8   :  { %v678_v2 = vsel %vm400_vm7, 1.0, %v755_v14 }
 0x3e9   :  { %v405_v4 = vmul.f32 %v678_v2, %v846_v34  ;;  %v420_v6 = vrot.slane %v678_v2, 1  ;;  %v403_v7 = vsub.f32 1.0, %v678_v2  ;;  %v432_v16 = vmul.f32 %v678_v2, %v854_v44 }
 0x3eb   :  { %v407_v8 = vrot.slane %v405_v4, 1  ;;  %710 = vpush %v420_v6  ;;  %v404_v9 = vmul.f32 %v403_v7, %v399_v1  ;;  %v434_v21 = vrot.slane %v432_v16, 1 }
 0x3ed   :  { %v409_v10 = vadd.f32 %v407_v8, %v393_v61 }
 0x3ef   :  { %v412_v13 = vadd.f32 %v410_v12, %v409_v10  ;;  %v95_v10 = vpop.xlane.xlu1 %94  ;;  %v133_v12 = vrot.slane %v946_v57, %v802_v11 }
 0x3f1   :  { %v413_v17 = vadd.f32 %v412_v13, %v362_v35  ;;  %v202_v35 = vadd.f32 %v194_v29, %v154_v28  ;;  %v181_v13 = vrot.slane %v95_v10, %v802_v11 }
 0x3f3   :  { %vm414_vm8 = vcmp.ge.f32.partialorder %v413_v17, 0.5 }
 0x3f4   :  { %v679_v19 = vsel %vm414_vm8, 1.0, %v755_v14 }
 0x3f5   :  { %v417_v22 = vsub.f32 1.0, %v679_v19  ;;  %712 = vpush %v679_v19  ;;  %v195_v19 = vmul.f32 %v817_v20, %v181_v13 }
 0x3f6   :  { %714 = vpush %v434_v21 }
 0x3f7   :  { %v418_v23 = vmul.f32 %v417_v22, %v413_v17  ;;  %v155_v17 = vmul.f32 %v809_v15, %v133_v12 }
 0x41c   :  { %s711_s2 = spop %710 }
 0x41d   :  { %v422_v27 = vstv %s711_s2 }
 0x41e   :  { %v424_v30 = vmul.f32 %v865_v58, %v422_v27 }
 0x420   :  { %v425_v37 = vadd.f32 %v677_v54, %v424_v30 }
 0x426   :  { %s713_s22 = spop %712 }
 0x427   :  { %v428_v36 = vstv %s713_s22  ;;  %s715_s23 = spop %714 }
 0x428   :  { %v430_v38 = vmul.f32 %v873_v63, %v428_v36  ;;  %v436_v39 = vstv %s715_s23 }
 0x429   :  { %v438_v5 = vmul.f32 %v817_v20, %v436_v39 }
 0x42a   :  { %v431_v40 = vadd.f32 %v430_v38, %v425_v37  ;;  %v67_v37 = vld [vmem:[%s1058_s1 + $0x7] sm:$0x1] }
 0x42b   :  { %v439_v42 = vadd.f32 %v438_v5, %v202_v35  ;;  %v1002_v38 = vmul.f32 %v788_v3, %v67_v37 }
 0x42c   :  { %653 = vst.msk [vmem:[%s1060_s3 + $0xc] sm:$0x7] %vm218_vm6, %v431_v40 }
 0x42d   :  { %v440_v43 = vadd.f32 %v439_v42, %v389_v41  ;;  %v99_v39 = vsel %vm77_vm1, %v1002_v38, 0.0 }
 0x42e   :  { %100 = vadd.xlane.f32.xlu1 %v99_v39 }
 0x42f   :  { %vm441_vm9 = vcmp.ge.f32.partialorder %v440_v43, 0.5 }
 0x430   :  { %v680_v45 = vsel %vm441_vm9, 1.0, %v755_v14 }
 0x431   :  { %v446_v46 = vsel %vm218_vm6, %v680_v45, 0.0  ;;  %v444_v22 = vsub.f32 1.0, %v680_v45 }
 0x432   :  { %447 = vadd.xlane.f32.xlu0 %v446_v46 }
 0x433   :  { %v445_v29 = vmul.f32 %v444_v22, %v440_v43 }
 0x4bf   :  { %v448_v18 = vpop.xlane.xlu0 %447 }
 0x4c0   :  { %v450_v50 = vmul.f32 %v448_v18, %v843_v33  ;;  %v449_v51 = vmul.f32 %v448_v18, %v846_v34 }
 0x4c2   :  { %v452_v52 = vrot.slane %v450_v50, 1  ;;  %v466_v0 = vrot.slane %v450_v50, 2 }
 0x4c4   :  { %v454_v53 = vadd.f32 %v452_v52, %v449_v51 }
 0x4c6   :  { %v455_v54 = vadd.f32 %v454_v53, %v404_v9 }
 0x4c8   :  { %vm456_vm10 = vcmp.ge.f32.partialorder %v455_v54, 0.5 }
 0x4c9   :  { %v681_v55 = vsel %vm456_vm10, 1.0, %v755_v14 }
 0x4ca   :  { %v461_v56 = vmul.f32 %v681_v55, %v846_v34  ;;  %v476_v59 = vrot.slane %v681_v55, 1  ;;  %v459_v31 = vsub.f32 1.0, %v681_v55  ;;  %v488_v2 = vmul.f32 %v681_v55, %v854_v44 }
 0x4cc   :  { %v463_v60 = vrot.slane %v461_v56, 1  ;;  %716 = vpush %v476_v59  ;;  %v460_v61 = vmul.f32 %v459_v31, %v455_v54  ;;  %v490_v7 = vrot.slane %v488_v2, 1 }
 0x4ce   :  { %v465_v62 = vadd.f32 %v463_v60, %v449_v51 }
 0x4d0   :  { %v468_v1 = vadd.f32 %v466_v0, %v465_v62  ;;  %v137_v62 = vrot.slane %v974_v48, %v802_v11 }
 0x4d2   :  { %v469_v4 = vadd.f32 %v468_v1, %v418_v23  ;;  %v203_v23 = vadd.f32 %v195_v19, %v155_v17  ;;  %v156_v2 = vmul.f32 %v809_v15, %v137_v62 }
 0x4d4   :  { %vm470_vm11 = vcmp.ge.f32.partialorder %v469_v4, 0.5 }
 0x4d5   :  { %v682_v6 = vsel %vm470_vm11, 1.0, %v755_v14 }
 0x4d6   :  { %v473_v8 = vsub.f32 1.0, %v682_v6  ;;  %718 = vpush %v682_v6 }
 0x4d7   :  { %720 = vpush %v490_v7 }
 0x4d8   :  { %v474_v9 = vmul.f32 %v473_v8, %v469_v4 }
 0x4fd   :  { %s717_s28 = spop %716 }
 0x4fe   :  { %v478_v16 = vstv %s717_s28 }
 0x4ff   :  { %v480_v21 = vmul.f32 %v865_v58, %v478_v16 }
 0x501   :  { %v481_v25 = vadd.f32 %v680_v45, %v480_v21 }
 0x507   :  { %s719_s29 = spop %718 }
 0x508   :  { %v484_v24 = vstv %s719_s29  ;;  %s721_s30 = spop %720 }
 0x509   :  { %v486_v26 = vmul.f32 %v873_v63, %v484_v24  ;;  %v492_v27 = vstv %s721_s30 }
 0x50a   :  { %v494_v57 = vmul.f32 %v817_v20, %v492_v27 }
 0x50b   :  { %v487_v28 = vadd.f32 %v486_v26, %v481_v25 }
 0x50c   :  { %v495_v30 = vadd.f32 %v494_v57, %v203_v23 }
 0x50d   :  { %654 = vst.msk [vmem:[%s1060_s3 + $0x10] sm:$0x7] %vm218_vm6, %v487_v28 }
 0x50e   :  { %v496_v32 = vadd.f32 %v495_v30, %v445_v29 }
 0x510   :  { %vm497_vm12 = vcmp.ge.f32.partialorder %v496_v32, 0.5 }
 0x511   :  { %v683_v35 = vsel %vm497_vm12, 1.0, %v755_v14 }
 0x512   :  { %v502_v36 = vsel %vm218_vm6, %v683_v35, 0.0  ;;  %v500_v7 = vsub.f32 1.0, %v683_v35 }
 0x513   :  { %503 = vadd.xlane.f32.xlu0 %v502_v36 }
 0x514   :  { %v501_v17 = vmul.f32 %v500_v7, %v496_v32 }
 0x5a0   :  { %v504_v5 = vpop.xlane.xlu0 %503 }
 0x5a1   :  { %v506_v40 = vmul.f32 %v504_v5, %v843_v33  ;;  %v505_v41 = vmul.f32 %v504_v5, %v846_v34 }
 0x5a3   :  { %v508_v42 = vrot.slane %v506_v40, 1  ;;  %v522_v52 = vrot.slane %v506_v40, 2 }
 0x5a5   :  { %v510_v43 = vadd.f32 %v508_v42, %v505_v41 }
 0x5a7   :  { %v511_v45 = vadd.f32 %v510_v43, %v460_v61  ;;  %v98_v61 = vpop.xlane.xlu1 %97 }
 0x5a8   :  { %v185_v0 = vrot.slane %v98_v61, %v802_v11 }
 0x5a9   :  { %vm512_vm13 = vcmp.ge.f32.partialorder %v511_v45, 0.5 }
 0x5aa   :  { %v684_v46 = vsel %vm512_vm13, 1.0, %v755_v14  ;;  %v196_v4 = vmul.f32 %v817_v20, %v185_v0 }
 0x5ab   :  { %v517_v47 = vmul.f32 %v684_v46, %v846_v34  ;;  %v532_v49 = vrot.slane %v684_v46, 1  ;;  %v515_v3 = vsub.f32 1.0, %v684_v46  ;;  %v544_v54 = vmul.f32 %v684_v46, %v854_v44 }
 0x5ac   :  { %v204_v8 = vadd.f32 %v196_v4, %v156_v2 }
 0x5ad   :  { %v519_v18 = vrot.slane %v517_v47, 1  ;;  %722 = vpush %v532_v49  ;;  %v516_v50 = vmul.f32 %v515_v3, %v511_v45  ;;  %v546_v59 = vrot.slane %v544_v54, 1  ;;  %v101_v49 = vpop.xlane.xlu1 %100  ;;  %v141_v3 = vrot.slane %v1002_v38, %v802_v11 }
 0x5af   :  { %v521_v51 = vadd.f32 %v519_v18, %v505_v41  ;;  %v189_v18 = vrot.slane %v101_v49, %v802_v11 }
 0x5b1   :  { %v524_v53 = vadd.f32 %v522_v52, %v521_v51  ;;  %v157_v51 = vmul.f32 %v809_v15, %v141_v3 }
 0x5b3   :  { %v525_v55 = vadd.f32 %v524_v53, %v474_v9 }
 0x5b5   :  { %vm526_vm1 = vcmp.ge.f32.partialorder %v525_v55, 0.5 }
 0x5b6   :  { %v685_v56 = vsel %vm526_vm1, 1.0, %v755_v14 }
 0x5b7   :  { %v529_v31 = vsub.f32 1.0, %v685_v56  ;;  %724 = vpush %v685_v56 }
 0x5b8   :  { %726 = vpush %v546_v59 }
 0x5b9   :  { %v530_v60 = vmul.f32 %v529_v31, %v525_v55 }
 0x5de   :  { %s723_s1 = spop %722 }
 0x5df   :  { %v534_v1 = vstv %s723_s1 }
 0x5e0   :  { %v536_v6 = vmul.f32 %v865_v58, %v534_v1 }
 0x5e2   :  { %v537_v10 = vadd.f32 %v683_v35, %v536_v6 }
 0x5e8   :  { %s725_s8 = spop %724 }
 0x5e9   :  { %v540_v9 = vstv %s725_s8  ;;  %s727_s9 = spop %726 }
 0x5ea   :  { %v542_v12 = vmul.f32 %v873_v63, %v540_v9  ;;  %v548_v13 = vstv %s727_s9 }
 0x5eb   :  { %v550_v48 = vmul.f32 %v817_v20, %v548_v13 }
 0x5ec   :  { %v543_v16 = vadd.f32 %v542_v12, %v537_v10 }
 0x5ed   :  { %v551_v19 = vadd.f32 %v550_v48, %v204_v8 }
 0x5ee   :  { %655 = vst.msk [vmem:[%s1060_s3 + $0x14] sm:$0x7] %vm218_vm6, %v543_v16 }
 0x5ef   :  { %v552_v21 = vadd.f32 %v551_v19, %v501_v17 }
 0x5f1   :  { %vm553_vm14 = vcmp.ge.f32.partialorder %v552_v21, 0.5 }
 0x5f2   :  { %v686_v22 = vsel %vm553_vm14, 1.0, %v755_v14 }
 0x5f3   :  { %v558_v23 = vsel %vm218_vm6, %v686_v22, 0.0  ;;  %v556_v53 = vsub.f32 1.0, %v686_v22 }
 0x5f4   :  { %559 = vadd.xlane.f32.xlu0 %v558_v23 }
 0x5f5   :  { %v557_v61 = vmul.f32 %v556_v53, %v552_v21 }
 0x681   :  { %v560_v24 = vpop.xlane.xlu0 %559 }
 0x682   :  { %v562_v25 = vmul.f32 %v560_v24, %v843_v33  ;;  %v561_v26 = vmul.f32 %v560_v24, %v846_v34 }
 0x684   :  { %v564_v27 = vrot.slane %v562_v25, 1  ;;  %v578_v5 = vrot.slane %v562_v25, 2 }
 0x686   :  { %v566_v57 = vadd.f32 %v564_v27, %v561_v26 }
 0x688   :  { %v567_v28 = vadd.f32 %v566_v57, %v516_v50 }
 0x68a   :  { %vm568_vm15 = vcmp.ge.f32.partialorder %v567_v28, 0.5 }
 0x68b   :  { %v687_v29 = vsel %vm568_vm15, 1.0, %v755_v14 }
 0x68c   :  { %v573_v30 = vmul.f32 %v687_v29, %v846_v34  ;;  %v588_v32 = vrot.slane %v687_v29, 1  ;;  %v571_v35 = vsub.f32 1.0, %v687_v29  ;;  %v600_v41 = vmul.f32 %v687_v29, %v854_v44 }
 0x68d   :  { %v197_v44 = vmul.f32 %v817_v20, %v189_v18 }
 0x68e   :  { %v575_v36 = vrot.slane %v573_v30, 1  ;;  %728 = vpush %v588_v32  ;;  %v572_v37 = vmul.f32 %v571_v35, %v567_v28  ;;  %v602_v45 = vrot.slane %v600_v41, 1 }
 0x68f   :  { %v205_v54 = vadd.f32 %v197_v44, %v157_v51 }
 0x690   :  { %v577_v39 = vadd.f32 %v575_v36, %v561_v26 }
 0x692   :  { %v580_v40 = vadd.f32 %v578_v5, %v577_v39 }
 0x694   :  { %v581_v42 = vadd.f32 %v580_v40, %v530_v60 }
 0x696   :  { %vm582_vm0 = vcmp.ge.f32.partialorder %v581_v42, 0.5 }
 0x697   :  { %v688_v43 = vsel %vm582_vm0, 1.0, %v755_v14 }
 0x698   :  { %v585_v46 = vsub.f32 1.0, %v688_v43  ;;  %730 = vpush %v688_v43 }
 0x699   :  { %732 = vpush %v602_v45 }
 0x69a   :  { %v586_v47 = vmul.f32 %v585_v46, %v581_v42 }
 0x6bf   :  { %s729_s12 = spop %728 }
 0x6c0   :  { %v590_v50 = vstv %s729_s12 }
 0x6c1   :  { %v592_v52 = vmul.f32 %v865_v58, %v590_v50 }
 0x6c3   :  { %v593_v56 = vadd.f32 %v686_v22, %v592_v52 }
 0x6c9   :  { %s731_s13 = spop %730 }
 0x6ca   :  { %v596_v55 = vstv %s731_s13  ;;  %s733_s14 = spop %732 }
 0x6cb   :  { %v598_v59 = vmul.f32 %v873_v63, %v596_v55  ;;  %v604_v31 = vstv %s733_s14 }
 0x6cc   :  { %v606_v38 = vmul.f32 %v817_v20, %v604_v31 }
 0x6cd   :  { %v599_v60 = vadd.f32 %v598_v59, %v593_v56 }
 0x6ce   :  { %v607_v11 = vadd.f32 %v606_v38, %v205_v54 }
 0x6cf   :  { %656 = vst.msk [vmem:[%s1060_s3 + $0x18] sm:$0x7] %vm218_vm6, %v599_v60 }
 0x6d0   :  { %v608_v15 = vadd.f32 %v607_v11, %v557_v61 }
 0x6d2   :  { %vm609_vm2 = vcmp.ge.f32.partialorder %v608_v15, 0.5 }
 0x6d3   :  { %v689_v62 = vsel %vm609_vm2, 1.0, %v755_v14 }
 0x6d4   :  { %v612_v0 = vsel %vm218_vm6, %v689_v62, 0.0 }
 0x6d5   :  { %613 = vadd.xlane.f32.xlu0 %v612_v0 }
 0x762   :  { %v614_v1 = vpop.xlane.xlu0 %613 }
 0x763   :  { %v616_v2 = vmul.f32 %v614_v1, %v843_v33  ;;  %v615_v20 = vmul.f32 %v614_v1, %v846_v34 }
 0x765   :  { %v618_v4 = vrot.slane %v616_v2, 1  ;;  %v630_v48 = vrot.slane %v616_v2, 2 }
 0x767   :  { %v620_v6 = vadd.f32 %v618_v4, %v615_v20 }
 0x769   :  { %v621_v7 = vadd.f32 %v620_v6, %v572_v37 }
 0x76b   :  { %vm622_vm3 = vcmp.ge.f32.partialorder %v621_v7, 0.5 }
 0x76c   :  { %v690_v8 = vsel %vm622_vm3, 1.0, %v755_v14 }
 0x76d   :  { %v625_v9 = vmul.f32 %v690_v8, %v846_v34  ;;  %v638_v10 = vrot.slane %v690_v8, 1 }
 0x76f   :  { %v627_v12 = vrot.slane %v625_v9, 1  ;;  %734 = vpush %v638_v10 }
 0x771   :  { %v629_v13 = vadd.f32 %v627_v12, %v615_v20 }
 0x773   :  { %v632_v16 = vadd.f32 %v630_v48, %v629_v13 }
 0x775   :  { %v633_v17 = vadd.f32 %v632_v16, %v586_v47 }
 0x777   :  { %vm634_vm4 = vcmp.ge.f32.partialorder %v633_v17, 0.5 }
 0x778   :  { %v691_v33 = vsel %vm634_vm4, 1.0, %v755_v14 }
 0x779   :  { %736 = vpush %v691_v33 }
 0x7a0   :  { %s735_s17 = spop %734 }
 0x7a1   :  { %v640_v19 = vstv %s735_s17 }
 0x7a2   :  { %v642_v21 = vmul.f32 %v865_v58, %v640_v19 }
 0x7a4   :  { %v643_v23 = vadd.f32 %v689_v62, %v642_v21 }
 0x7aa   :  { %s737_s18 = spop %736 }
 0x7ab   :  { %v646_v22 = vstv %s737_s18 }
 0x7ac   :  { %v648_v34 = vmul.f32 %v873_v63, %v646_v22 }
 0x7ae   :  { %v649_v24 = vadd.f32 %v648_v34, %v643_v23 }
 0x7b0   :  { %657 = vst.msk [vmem:[%s1060_s3 + $0x1c] sm:$0x7] %vm218_vm6, %v649_v24 }
 0x7b1   :  { %662 = vsyncpa [#allocation3], 1 }

</bundles_post_ra>
